<compile_context>
chip_gen: v7x
topology: tpu7x:2x2x1
jax: 0.10.0
libtpu: 0.0.40
codegen_flags: <defaults>
</compile_context>

<pallas_src>
import math
from functools import partial

import jax
import jax.numpy as jnp
from jax import lax
from jax.experimental import pallas as pl
from jax.experimental.pallas import tpu as pltpu

HIDDEN = 100
H_PAD = 128        # padded hidden; gate k occupies lanes [k*H_PAD, (k+1)*H_PAD)
C_PAD = 128        # padded class dim (lane-dense output store)
B_PAD = 8          # batch padded to one sublane tile
MAX_TIME_CHUNK = 32


def _pick_time_chunk(T):
    """Largest divisor of T that is <= MAX_TIME_CHUNK (keeps the grid exact)."""
    for c in range(min(T, MAX_TIME_CHUNK), 0, -1):
        if T % c == 0:
            return c
    return 1


def lstm1_kernel(x_ref, wih_ref, whh_ref, b_ref, wfc_ref, bfc_ref, out_ref,
                 xw_s, h_s, c_s, *, chunk, n_chunks):
    # x_ref:   (chunk*Bp, F)  bf16, time-major; rows t*Bp..t*Bp+Bp-1 = step t
    # wih_ref: (F, 4*Hp)      bf16, padded gate lanes zero
    # whh_ref: (Hp, 4*Hp)     bf16, padded rows / gate lanes zero
    # b_ref:   (1, 4*Hp)      f32, b_ih + b_hh, padded lanes zero
    # wfc_ref: (Hp, Cp)       bf16, padded rows / cols zero
    # bfc_ref: (1, Cp)        f32, padded lanes -1e30 (softmax-neutral)
    # out_ref: (Bp, Cp)       f32
    # xw_s:    VMEM (chunk, Bp, 4*Hp) f32   per-step gate slabs (aligned)
    # h_s,c_s: VMEM (Bp, Hp) f32            carried hidden/cell state
    t_chunk = pl.program_id(0)
    Bp, Hp = h_s.shape

    @pl.when(t_chunk == 0)
    def _():
        h_s[...] = jnp.zeros_like(h_s)
        c_s[...] = jnp.zeros_like(c_s)

    # Hoisted input projection for this chunk: one bf16 MXU matmul for all
    # `chunk` timesteps (bias folded in), stored to a sublane-aligned scratch
    # so the per-step read inside the recurrence is a plain vld.
    xw = jnp.dot(x_ref[...], wih_ref[...],
                 preferred_element_type=jnp.float32) + b_ref[...]
    xw_s[...] = xw.reshape(chunk, Bp, 4 * Hp)

    whh = whh_ref[...]                       # (Hp, 4Hp) bf16, loop-invariant

    def step(t, carry):
        h, c = carry
        # Single bf16 MXU push per step on the serial chain; f32 accumulate.
        gates = xw_s[t] + jnp.dot(h.astype(whh.dtype), whh,
                                  preferred_element_type=jnp.float32)
        i = jax.nn.sigmoid(gates[:, 0 * Hp:1 * Hp])
        f = jax.nn.sigmoid(gates[:, 1 * Hp:2 * Hp])
        g = jnp.tanh(gates[:, 2 * Hp:3 * Hp])
        o = jax.nn.sigmoid(gates[:, 3 * Hp:4 * Hp])
        c = f * c + i * g
        h = o * jnp.tanh(c)
        return h, c

    unroll = 8 if chunk % 8 == 0 else chunk          # chunk <= 32, bounded
    h, c = lax.fori_loop(0, chunk, step, (h_s[...], c_s[...]), unroll=unroll)
    h_s[...] = h
    c_s[...] = c

    @pl.when(t_chunk == n_chunks - 1)
    def _():
        # ReLU on last hidden state (padded h lanes are exactly 0 already).
        hr = jnp.maximum(h, 0.0)
        # Final linear + softmax.  Padded logit lanes sit at -1e30 so their
        # exp underflows to 0 and never affects the normalization.
        logits = jnp.dot(hr.astype(wfc_ref.dtype), wfc_ref[...],
                         preferred_element_type=jnp.float32) + bfc_ref[...]
        m = jnp.max(logits, axis=1, keepdims=True)
        e = jnp.exp(logits - m)
        inv = pl.reciprocal(jnp.sum(e, axis=1, keepdims=True), approx=True)
        out_ref[...] = e * inv


@jax.jit
def lstm1_forward(x, params):
    """x: (B, T, F) float32, batch_first like the PyTorch module."""
    w_ih, w_hh, b_ih, b_hh, w_fc, b_fc = params
    B, T, F = x.shape
    H = w_hh.shape[1]
    C = w_fc.shape[0]
    Hp, Cp, Bp = H_PAD, C_PAD, B_PAD
    assert B <= Bp, "batch > 8 needs a batch grid axis (see TODO at top)"

    chunk = _pick_time_chunk(T)
    n_chunks = T // chunk

    # ---- layout plumbing in plain JAX (time-major, padded, bf16 weights) ----
    x_tm = jnp.transpose(x, (1, 0, 2)).astype(jnp.float32)          # (T, B, F)
    x_tm = jnp.pad(x_tm, ((0, 0), (0, Bp - B), (0, 0)))             # (T, Bp, F)
    x_tm = x_tm.reshape(T * Bp, F).astype(jnp.bfloat16)

    wih_p = jnp.pad(jnp.transpose(w_ih).astype(jnp.float32).reshape(F, 4, H),
                    ((0, 0), (0, 0), (0, Hp - H))
                    ).reshape(F, 4 * Hp).astype(jnp.bfloat16)
    whh_p = jnp.pad(jnp.transpose(w_hh).astype(jnp.float32).reshape(H, 4, H),
                    ((0, Hp - H), (0, 0), (0, Hp - H))
                    ).reshape(Hp, 4 * Hp).astype(jnp.bfloat16)
    b_p = jnp.pad((b_ih + b_hh).astype(jnp.float32).reshape(4, H),
                  ((0, 0), (0, Hp - H))).reshape(1, 4 * Hp)
    wfc_p = jnp.zeros((Hp, Cp), jnp.float32).at[:H, :C].set(
        jnp.transpose(w_fc).astype(jnp.float32)).astype(jnp.bfloat16)
    bfc_p = jnp.full((1, Cp), -1e30, jnp.float32).at[0, :C].set(
        b_fc.astype(jnp.float32))

    out_padded = pl.pallas_call(
        partial(lstm1_kernel, chunk=chunk, n_chunks=n_chunks),
        out_shape=jax.ShapeDtypeStruct((Bp, Cp), jnp.float32),
        grid=(n_chunks,),
        in_specs=[
            pl.BlockSpec((chunk * Bp, F), lambda t: (t, 0)),   # x: time-chunked
            pl.BlockSpec((F, 4 * Hp), lambda t: (0, 0)),       # invariant weights
            pl.BlockSpec((Hp, 4 * Hp), lambda t: (0, 0)),
            pl.BlockSpec((1, 4 * Hp), lambda t: (0, 0)),
            pl.BlockSpec((Hp, Cp), lambda t: (0, 0)),
            pl.BlockSpec((1, Cp), lambda t: (0, 0)),
        ],
        out_specs=pl.BlockSpec((Bp, Cp), lambda t: (0, 0)),
        scratch_shapes=[
            pltpu.VMEM((chunk, Bp, 4 * Hp), jnp.float32),      # per-step gate slabs
            pltpu.VMEM((Bp, Hp), jnp.float32),                 # h carry
            pltpu.VMEM((Bp, Hp), jnp.float32),                 # c carry
        ],
        compiler_params=pltpu.CompilerParams(
            dimension_semantics=("arbitrary",),
            vmem_limit_bytes=32 * 1024 * 1024,
        ),
    )(x_tm, wih_p, whh_p, b_p, wfc_p, bfc_p)
    return out_padded[:B, :C]


def lstm1_reference(x, params):
    """Pure-JAX reference mirroring the PyTorch forward (high-precision matmuls)."""
    w_ih, w_hh, b_ih, b_hh, w_fc, b_fc = params
    B, T, F = x.shape
    H = w_hh.shape[1]
    hp = lax.Precision.HIGHEST

    def step(carry, x_t):
        h, c = carry
        gates = (jnp.dot(x_t, w_ih.T, precision=hp) + b_ih
                 + jnp.dot(h, w_hh.T, precision=hp) + b_hh)
        i = jax.nn.sigmoid(gates[:, 0:H])
        f = jax.nn.sigmoid(gates[:, H:2 * H])
        g = jnp.tanh(gates[:, 2 * H:3 * H])
        o = jax.nn.sigmoid(gates[:, 3 * H:4 * H])
        c_new = f * c + i * g
        h_new = o * jnp.tanh(c_new)
        return (h_new, c_new), None

    h0 = jnp.zeros((B, H), jnp.float32)
    c0 = jnp.zeros((B, H), jnp.float32)
    (h_last, _), _ = lax.scan(step, (h0, c0), jnp.transpose(x, (1, 0, 2)))
    h_last = jnp.maximum(h_last, 0.0)
    logits = jnp.dot(h_last, w_fc.T, precision=hp) + b_fc
    return jax.nn.softmax(logits, axis=1)


def init_params(key, input_size, hidden, n_classes):
    """Deterministic init matching PyTorch shapes: U(-1/sqrt(H), 1/sqrt(H))."""
    ks = jax.random.split(key, 6)
    bound = 1.0 / math.sqrt(hidden)
    u = lambda k, shape: jax.random.uniform(
        k, shape, jnp.float32, minval=-bound, maxval=bound)
    w_ih = u(ks[0], (4 * hidden, input_size))   # nn.LSTM weight_ih_l0
    w_hh = u(ks[1], (4 * hidden, hidden))       # nn.LSTM weight_hh_l0
    b_ih = u(ks[2], (4 * hidden,))              # nn.LSTM bias_ih_l0
    b_hh = u(ks[3], (4 * hidden,))              # nn.LSTM bias_hh_l0
    w_fc = u(ks[4], (n_classes, hidden))        # nn.Linear weight
    b_fc = u(ks[5], (n_classes,))               # nn.Linear bias
    return (w_ih, w_hh, b_ih, b_hh, w_fc, b_fc)


if __name__ == "__main__":
    key = jax.random.PRNGKey(0)
    kx, kp = jax.random.split(key)

    # Small shapes: batch=2, seq=8, features=16, hidden=100, n_classes=3.
    B, T, F, C = 2, 8, 16, 3
    x = jax.random.normal(kx, (B, T, F), dtype=jnp.float32)
    params = init_params(kp, F, HIDDEN, C)

    out = jax.block_until_ready(lstm1_forward(x, params))
    ref = jax.block_until_ready(lstm1_reference(x, params))

    assert out.shape == (B, C), out.shape
    # Kernel runs single-pass bf16 MXU matmuls (f32 accumulation); tolerance
    # reflects bf16 matmul precision vs. the HIGHEST-precision reference.
    assert jnp.allclose(out, ref, rtol=1e-2, atol=1e-2), (out, ref)
    print("KERNEL_OK")
</pallas_src>

<mosaic_0001>
module attributes {stable_mosaic.version = 11 : i64} {
  func.func @lstm1_kernel(%arg0: i32, %arg1: memref<64x16xbf16, #tpu.memory_space<vmem>>, %arg2: memref<16x512xbf16, #tpu.memory_space<vmem>>, %arg3: memref<128x512xbf16, #tpu.memory_space<vmem>>, %arg4: memref<1x512xf32, #tpu.memory_space<vmem>>, %arg5: memref<128x128xbf16, #tpu.memory_space<vmem>>, %arg6: memref<1x128xf32, #tpu.memory_space<vmem>>, %arg7: memref<8x128xf32, #tpu.memory_space<vmem>>, %arg8: memref<8x8x512xf32, #tpu.memory_space<vmem>>, %arg9: memref<8x128xf32, #tpu.memory_space<vmem>>, %arg10: memref<8x128xf32, #tpu.memory_space<vmem>>) attributes {dimension_semantics = [#tpu.dimension_semantics<arbitrary>], iteration_bounds = array<i64: 1>, scalar_prefetch = 0 : i64, scratch_operands = 3 : i64, tpu.core_type = #tpu.core_type<tc>, window_params = [{transform_indices = @transform_0, window_bounds = array<i64: 64, 16>}, {pipeline_mode = #tpu.pipeline_mode<synchronous>, transform_indices = @transform_1, window_bounds = array<i64: 16, 512>}, {pipeline_mode = #tpu.pipeline_mode<synchronous>, transform_indices = @transform_2, window_bounds = array<i64: 128, 512>}, {pipeline_mode = #tpu.pipeline_mode<synchronous>, transform_indices = @transform_3, window_bounds = array<i64: 1, 512>}, {pipeline_mode = #tpu.pipeline_mode<synchronous>, transform_indices = @transform_4, window_bounds = array<i64: 128, 128>}, {pipeline_mode = #tpu.pipeline_mode<synchronous>, transform_indices = @transform_5, window_bounds = array<i64: 1, 128>}, {pipeline_mode = #tpu.pipeline_mode<synchronous>, transform_indices = @transform_6, window_bounds = array<i64: 8, 128>}]} {
    %c0_i32 = arith.constant 0 : i32
    %0 = arith.cmpi eq, %arg0, %c0_i32 : i32
    %1 = arith.extui %0 : i1 to i32
    %c0_i32_0 = arith.constant 0 : i32
    %2 = arith.cmpi ne, %1, %c0_i32_0 : i32
    scf.if %2 {
      %cst_70 = arith.constant 0.000000e+00 : f32
      %267 = vector.broadcast %cst_70 : f32 to vector<8x128xf32>
      %c0_71 = arith.constant 0 : index
      %c0_72 = arith.constant 0 : index
      %268 = vector.load %arg9[%c0_71, %c0_72] : memref<8x128xf32, #tpu.memory_space<vmem>>, vector<8x128xf32>
      tpu.vector_store %arg9[%c0_71, %c0_72], %267 {strides = array<i32>} : memref<8x128xf32, #tpu.memory_space<vmem>>, vector<8x128xf32>,
      %cst_73 = arith.constant 0.000000e+00 : f32
      %269 = vector.broadcast %cst_73 : f32 to vector<8x128xf32>
      %c0_74 = arith.constant 0 : index
      %c0_75 = arith.constant 0 : index
      %270 = vector.load %arg10[%c0_74, %c0_75] : memref<8x128xf32, #tpu.memory_space<vmem>>, vector<8x128xf32>
      tpu.vector_store %arg10[%c0_74, %c0_75], %269 {strides = array<i32>} : memref<8x128xf32, #tpu.memory_space<vmem>>, vector<8x128xf32>,
    } else {
    }
    %c0 = arith.constant 0 : index
    %c0_1 = arith.constant 0 : index
    %3 = vector.load %arg1[%c0, %c0_1] : memref<64x16xbf16, #tpu.memory_space<vmem>>, vector<64x16xbf16>
    %c0_2 = arith.constant 0 : index
    %c0_3 = arith.constant 0 : index
    %4 = vector.load %arg2[%c0_2, %c0_3] : memref<16x512xbf16, #tpu.memory_space<vmem>>, vector<16x512xbf16>
    %cst = arith.constant dense<0.000000e+00> : vector<64x512xf32>
    %5 = tpu.matmul %3, %4, %cst {dimension_numbers = #tpu.dot_dimension_numbers<[1], [0], [0], [1], [0, 0, 1, 1], [], []>} : vector<64x16xbf16>, vector<16x512xbf16>, vector<64x512xf32> -> vector<64x512xf32>
    %c0_4 = arith.constant 0 : index
    %c0_5 = arith.constant 0 : index
    %6 = vector.load %arg4[%c0_4, %c0_5] : memref<1x512xf32, #tpu.memory_space<vmem>>, vector<1x512xf32>
    %7 = vector.broadcast %6 : vector<1x512xf32> to vector<64x512xf32>
    %8 = arith.addf %5, %7 : vector<64x512xf32>
    %9 = vector.shape_cast %8 : vector<64x512xf32> to vector<8x8x512xf32>
    %c0_6 = arith.constant 0 : index
    %c0_7 = arith.constant 0 : index
    %c0_8 = arith.constant 0 : index
    %10 = vector.load %arg8[%c0_6, %c0_7, %c0_8] : memref<8x8x512xf32, #tpu.memory_space<vmem>>, vector<8x8x512xf32>
    tpu.vector_store %arg8[%c0_6, %c0_7, %c0_8], %9 {strides = array<i32>} : memref<8x8x512xf32, #tpu.memory_space<vmem>>, vector<8x8x512xf32>,
    %c0_9 = arith.constant 0 : index
    %c0_10 = arith.constant 0 : index
    %11 = vector.load %arg3[%c0_9, %c0_10] : memref<128x512xbf16, #tpu.memory_space<vmem>>, vector<128x512xbf16>
    %c0_11 = arith.constant 0 : index
    %c0_12 = arith.constant 0 : index
    %12 = vector.load %arg9[%c0_11, %c0_12] : memref<8x128xf32, #tpu.memory_space<vmem>>, vector<8x128xf32>
    %c0_13 = arith.constant 0 : index
    %c0_14 = arith.constant 0 : index
    %13 = vector.load %arg10[%c0_13, %c0_14] : memref<8x128xf32, #tpu.memory_space<vmem>>, vector<8x128xf32>
    %c0_i32_15 = arith.constant 0 : i32
    %14 = arith.index_cast %c0_i32_15 : i32 to index
    %c0_16 = arith.constant 0 : index
    %c0_17 = arith.constant 0 : index
    %15 = vector.load %arg8[%14, %c0_16, %c0_17] : memref<8x8x512xf32, #tpu.memory_space<vmem>>, vector<1x8x512xf32>
    %16 = vector.shape_cast %15 : vector<1x8x512xf32> to vector<8x512xf32>
    %17 = arith.truncf %12 : vector<8x128xf32> to vector<8x128xbf16>
    %cst_18 = arith.constant dense<0.000000e+00> : vector<8x512xf32>
    %18 = tpu.matmul %17, %11, %cst_18 {dimension_numbers = #tpu.dot_dimension_numbers<[1], [0], [0], [1], [0, 0, 1, 1], [], []>} : vector<8x128xbf16>, vector<128x512xbf16>, vector<8x512xf32> -> vector<8x512xf32>
    %19 = arith.addf %16, %18 : vector<8x512xf32>
    %20 = vector.extract_strided_slice %19 {offsets = [0, 0], sizes = [8, 128], strides = [1, 1]} : vector<8x512xf32> to vector<8x128xf32>
    %21 = arith.negf %20 : vector<8x128xf32>
    %22 = math.exp %21 : vector<8x128xf32>
    %cst_19 = arith.constant 1.000000e+00 : f32
    %23 = vector.broadcast %cst_19 : f32 to vector<8x128xf32>
    %24 = arith.addf %23, %22 : vector<8x128xf32>
    %25 = arith.divf %23, %24 : vector<8x128xf32>
    %26 = vector.extract_strided_slice %19 {offsets = [0, 128], sizes = [8, 128], strides = [1, 1]} : vector<8x512xf32> to vector<8x128xf32>
    %27 = arith.negf %26 : vector<8x128xf32>
    %28 = math.exp %27 : vector<8x128xf32>
    %cst_20 = arith.constant 1.000000e+00 : f32
    %29 = vector.broadcast %cst_20 : f32 to vector<8x128xf32>
    %30 = arith.addf %29, %28 : vector<8x128xf32>
    %31 = arith.divf %29, %30 : vector<8x128xf32>
    %32 = vector.extract_strided_slice %19 {offsets = [0, 256], sizes = [8, 128], strides = [1, 1]} : vector<8x512xf32> to vector<8x128xf32>
    %33 = math.tanh %32 : vector<8x128xf32>
    %34 = vector.extract_strided_slice %19 {offsets = [0, 384], sizes = [8, 128], strides = [1, 1]} : vector<8x512xf32> to vector<8x128xf32>
    %35 = arith.negf %34 : vector<8x128xf32>
    %36 = math.exp %35 : vector<8x128xf32>
    %cst_21 = arith.constant 1.000000e+00 : f32
    %37 = vector.broadcast %cst_21 : f32 to vector<8x128xf32>
    %38 = arith.addf %37, %36 : vector<8x128xf32>
    %39 = arith.divf %37, %38 : vector<8x128xf32>
    %40 = arith.mulf %31, %13 : vector<8x128xf32>
    %41 = arith.mulf %25, %33 : vector<8x128xf32>
    %42 = arith.addf %40, %41 : vector<8x128xf32>
    %43 = math.tanh %42 : vector<8x128xf32>
    %44 = arith.mulf %39, %43 : vector<8x128xf32>
    %c1_i32 = arith.constant 1 : i32
    %45 = arith.index_cast %c1_i32 : i32 to index
    %c0_22 = arith.constant 0 : index
    %c0_23 = arith.constant 0 : index
    %46 = vector.load %arg8[%45, %c0_22, %c0_23] : memref<8x8x512xf32, #tpu.memory_space<vmem>>, vector<1x8x512xf32>
    %47 = vector.shape_cast %46 : vector<1x8x512xf32> to vector<8x512xf32>
    %48 = arith.truncf %44 : vector<8x128xf32> to vector<8x128xbf16>
    %cst_24 = arith.constant dense<0.000000e+00> : vector<8x512xf32>
    %49 = tpu.matmul %48, %11, %cst_24 {dimension_numbers = #tpu.dot_dimension_numbers<[1], [0], [0], [1], [0, 0, 1, 1], [], []>} : vector<8x128xbf16>, vector<128x512xbf16>, vector<8x512xf32> -> vector<8x512xf32>
    %50 = arith.addf %47, %49 : vector<8x512xf32>
    %51 = vector.extract_strided_slice %50 {offsets = [0, 0], sizes = [8, 128], strides = [1, 1]} : vector<8x512xf32> to vector<8x128xf32>
    %52 = arith.negf %51 : vector<8x128xf32>
    %53 = math.exp %52 : vector<8x128xf32>
    %cst_25 = arith.constant 1.000000e+00 : f32
    %54 = vector.broadcast %cst_25 : f32 to vector<8x128xf32>
    %55 = arith.addf %54, %53 : vector<8x128xf32>
    %56 = arith.divf %54, %55 : vector<8x128xf32>
    %57 = vector.extract_strided_slice %50 {offsets = [0, 128], sizes = [8, 128], strides = [1, 1]} : vector<8x512xf32> to vector<8x128xf32>
    %58 = arith.negf %57 : vector<8x128xf32>
    %59 = math.exp %58 : vector<8x128xf32>
    %cst_26 = arith.constant 1.000000e+00 : f32
    %60 = vector.broadcast %cst_26 : f32 to vector<8x128xf32>
    %61 = arith.addf %60, %59 : vector<8x128xf32>
    %62 = arith.divf %60, %61 : vector<8x128xf32>
    %63 = vector.extract_strided_slice %50 {offsets = [0, 256], sizes = [8, 128], strides = [1, 1]} : vector<8x512xf32> to vector<8x128xf32>
    %64 = math.tanh %63 : vector<8x128xf32>
    %65 = vector.extract_strided_slice %50 {offsets = [0, 384], sizes = [8, 128], strides = [1, 1]} : vector<8x512xf32> to vector<8x128xf32>
    %66 = arith.negf %65 : vector<8x128xf32>
    %67 = math.exp %66 : vector<8x128xf32>
    %cst_27 = arith.constant 1.000000e+00 : f32
    %68 = vector.broadcast %cst_27 : f32 to vector<8x128xf32>
    %69 = arith.addf %68, %67 : vector<8x128xf32>
    %70 = arith.divf %68, %69 : vector<8x128xf32>
    %71 = arith.mulf %62, %42 : vector<8x128xf32>
    %72 = arith.mulf %56, %64 : vector<8x128xf32>
    %73 = arith.addf %71, %72 : vector<8x128xf32>
    %74 = math.tanh %73 : vector<8x128xf32>
    %75 = arith.mulf %70, %74 : vector<8x128xf32>
    %c2_i32 = arith.constant 2 : i32
    %76 = arith.index_cast %c2_i32 : i32 to index
    %c0_28 = arith.constant 0 : index
    %c0_29 = arith.constant 0 : index
    %77 = vector.load %arg8[%76, %c0_28, %c0_29] : memref<8x8x512xf32, #tpu.memory_space<vmem>>, vector<1x8x512xf32>
    %78 = vector.shape_cast %77 : vector<1x8x512xf32> to vector<8x512xf32>
    %79 = arith.truncf %75 : vector<8x128xf32> to vector<8x128xbf16>
    %cst_30 = arith.constant dense<0.000000e+00> : vector<8x512xf32>
    %80 = tpu.matmul %79, %11, %cst_30 {dimension_numbers = #tpu.dot_dimension_numbers<[1], [0], [0], [1], [0, 0, 1, 1], [], []>} : vector<8x128xbf16>, vector<128x512xbf16>, vector<8x512xf32> -> vector<8x512xf32>
    %81 = arith.addf %78, %80 : vector<8x512xf32>
    %82 = vector.extract_strided_slice %81 {offsets = [0, 0], sizes = [8, 128], strides = [1, 1]} : vector<8x512xf32> to vector<8x128xf32>
    %83 = arith.negf %82 : vector<8x128xf32>
    %84 = math.exp %83 : vector<8x128xf32>
    %cst_31 = arith.constant 1.000000e+00 : f32
    %85 = vector.broadcast %cst_31 : f32 to vector<8x128xf32>
    %86 = arith.addf %85, %84 : vector<8x128xf32>
    %87 = arith.divf %85, %86 : vector<8x128xf32>
    %88 = vector.extract_strided_slice %81 {offsets = [0, 128], sizes = [8, 128], strides = [1, 1]} : vector<8x512xf32> to vector<8x128xf32>
    %89 = arith.negf %88 : vector<8x128xf32>
    %90 = math.exp %89 : vector<8x128xf32>
    %cst_32 = arith.constant 1.000000e+00 : f32
    %91 = vector.broadcast %cst_32 : f32 to vector<8x128xf32>
    %92 = arith.addf %91, %90 : vector<8x128xf32>
    %93 = arith.divf %91, %92 : vector<8x128xf32>
    %94 = vector.extract_strided_slice %81 {offsets = [0, 256], sizes = [8, 128], strides = [1, 1]} : vector<8x512xf32> to vector<8x128xf32>
    %95 = math.tanh %94 : vector<8x128xf32>
    %96 = vector.extract_strided_slice %81 {offsets = [0, 384], sizes = [8, 128], strides = [1, 1]} : vector<8x512xf32> to vector<8x128xf32>
    %97 = arith.negf %96 : vector<8x128xf32>
    %98 = math.exp %97 : vector<8x128xf32>
    %cst_33 = arith.constant 1.000000e+00 : f32
    %99 = vector.broadcast %cst_33 : f32 to vector<8x128xf32>
    %100 = arith.addf %99, %98 : vector<8x128xf32>
    %101 = arith.divf %99, %100 : vector<8x128xf32>
    %102 = arith.mulf %93, %73 : vector<8x128xf32>
    %103 = arith.mulf %87, %95 : vector<8x128xf32>
    %104 = arith.addf %102, %103 : vector<8x128xf32>
    %105 = math.tanh %104 : vector<8x128xf32>
    %106 = arith.mulf %101, %105 : vector<8x128xf32>
    %c3_i32 = arith.constant 3 : i32
    %107 = arith.index_cast %c3_i32 : i32 to index
    %c0_34 = arith.constant 0 : index
    %c0_35 = arith.constant 0 : index
    %108 = vector.load %arg8[%107, %c0_34, %c0_35] : memref<8x8x512xf32, #tpu.memory_space<vmem>>, vector<1x8x512xf32>
    %109 = vector.shape_cast %108 : vector<1x8x512xf32> to vector<8x512xf32>
    %110 = arith.truncf %106 : vector<8x128xf32> to vector<8x128xbf16>
    %cst_36 = arith.constant dense<0.000000e+00> : vector<8x512xf32>
    %111 = tpu.matmul %110, %11, %cst_36 {dimension_numbers = #tpu.dot_dimension_numbers<[1], [0], [0], [1], [0, 0, 1, 1], [], []>} : vector<8x128xbf16>, vector<128x512xbf16>, vector<8x512xf32> -> vector<8x512xf32>
    %112 = arith.addf %109, %111 : vector<8x512xf32>
    %113 = vector.extract_strided_slice %112 {offsets = [0, 0], sizes = [8, 128], strides = [1, 1]} : vector<8x512xf32> to vector<8x128xf32>
    %114 = arith.negf %113 : vector<8x128xf32>
    %115 = math.exp %114 : vector<8x128xf32>
    %cst_37 = arith.constant 1.000000e+00 : f32
    %116 = vector.broadcast %cst_37 : f32 to vector<8x128xf32>
    %117 = arith.addf %116, %115 : vector<8x128xf32>
    %118 = arith.divf %116, %117 : vector<8x128xf32>
    %119 = vector.extract_strided_slice %112 {offsets = [0, 128], sizes = [8, 128], strides = [1, 1]} : vector<8x512xf32> to vector<8x128xf32>
    %120 = arith.negf %119 : vector<8x128xf32>
    %121 = math.exp %120 : vector<8x128xf32>
    %cst_38 = arith.constant 1.000000e+00 : f32
    %122 = vector.broadcast %cst_38 : f32 to vector<8x128xf32>
    %123 = arith.addf %122, %121 : vector<8x128xf32>
    %124 = arith.divf %122, %123 : vector<8x128xf32>
    %125 = vector.extract_strided_slice %112 {offsets = [0, 256], sizes = [8, 128], strides = [1, 1]} : vector<8x512xf32> to vector<8x128xf32>
    %126 = math.tanh %125 : vector<8x128xf32>
    %127 = vector.extract_strided_slice %112 {offsets = [0, 384], sizes = [8, 128], strides = [1, 1]} : vector<8x512xf32> to vector<8x128xf32>
    %128 = arith.negf %127 : vector<8x128xf32>
    %129 = math.exp %128 : vector<8x128xf32>
    %cst_39 = arith.constant 1.000000e+00 : f32
    %130 = vector.broadcast %cst_39 : f32 to vector<8x128xf32>
    %131 = arith.addf %130, %129 : vector<8x128xf32>
    %132 = arith.divf %130, %131 : vector<8x128xf32>
    %133 = arith.mulf %124, %104 : vector<8x128xf32>
    %134 = arith.mulf %118, %126 : vector<8x128xf32>
    %135 = arith.addf %133, %134 : vector<8x128xf32>
    %136 = math.tanh %135 : vector<8x128xf32>
    %137 = arith.mulf %132, %136 : vector<8x128xf32>
    %c4_i32 = arith.constant 4 : i32
    %138 = arith.index_cast %c4_i32 : i32 to index
    %c0_40 = arith.constant 0 : index
    %c0_41 = arith.constant 0 : index
    %139 = vector.load %arg8[%138, %c0_40, %c0_41] : memref<8x8x512xf32, #tpu.memory_space<vmem>>, vector<1x8x512xf32>
    %140 = vector.shape_cast %139 : vector<1x8x512xf32> to vector<8x512xf32>
    %141 = arith.truncf %137 : vector<8x128xf32> to vector<8x128xbf16>
    %cst_42 = arith.constant dense<0.000000e+00> : vector<8x512xf32>
    %142 = tpu.matmul %141, %11, %cst_42 {dimension_numbers = #tpu.dot_dimension_numbers<[1], [0], [0], [1], [0, 0, 1, 1], [], []>} : vector<8x128xbf16>, vector<128x512xbf16>, vector<8x512xf32> -> vector<8x512xf32>
    %143 = arith.addf %140, %142 : vector<8x512xf32>
    %144 = vector.extract_strided_slice %143 {offsets = [0, 0], sizes = [8, 128], strides = [1, 1]} : vector<8x512xf32> to vector<8x128xf32>
    %145 = arith.negf %144 : vector<8x128xf32>
    %146 = math.exp %145 : vector<8x128xf32>
    %cst_43 = arith.constant 1.000000e+00 : f32
    %147 = vector.broadcast %cst_43 : f32 to vector<8x128xf32>
    %148 = arith.addf %147, %146 : vector<8x128xf32>
    %149 = arith.divf %147, %148 : vector<8x128xf32>
    %150 = vector.extract_strided_slice %143 {offsets = [0, 128], sizes = [8, 128], strides = [1, 1]} : vector<8x512xf32> to vector<8x128xf32>
    %151 = arith.negf %150 : vector<8x128xf32>
    %152 = math.exp %151 : vector<8x128xf32>
    %cst_44 = arith.constant 1.000000e+00 : f32
    %153 = vector.broadcast %cst_44 : f32 to vector<8x128xf32>
    %154 = arith.addf %153, %152 : vector<8x128xf32>
    %155 = arith.divf %153, %154 : vector<8x128xf32>
    %156 = vector.extract_strided_slice %143 {offsets = [0, 256], sizes = [8, 128], strides = [1, 1]} : vector<8x512xf32> to vector<8x128xf32>
    %157 = math.tanh %156 : vector<8x128xf32>
    %158 = vector.extract_strided_slice %143 {offsets = [0, 384], sizes = [8, 128], strides = [1, 1]} : vector<8x512xf32> to vector<8x128xf32>
    %159 = arith.negf %158 : vector<8x128xf32>
    %160 = math.exp %159 : vector<8x128xf32>
    %cst_45 = arith.constant 1.000000e+00 : f32
    %161 = vector.broadcast %cst_45 : f32 to vector<8x128xf32>
    %162 = arith.addf %161, %160 : vector<8x128xf32>
    %163 = arith.divf %161, %162 : vector<8x128xf32>
    %164 = arith.mulf %155, %135 : vector<8x128xf32>
    %165 = arith.mulf %149, %157 : vector<8x128xf32>
    %166 = arith.addf %164, %165 : vector<8x128xf32>
    %167 = math.tanh %166 : vector<8x128xf32>
    %168 = arith.mulf %163, %167 : vector<8x128xf32>
    %c5_i32 = arith.constant 5 : i32
    %169 = arith.index_cast %c5_i32 : i32 to index
    %c0_46 = arith.constant 0 : index
    %c0_47 = arith.constant 0 : index
    %170 = vector.load %arg8[%169, %c0_46, %c0_47] : memref<8x8x512xf32, #tpu.memory_space<vmem>>, vector<1x8x512xf32>
    %171 = vector.shape_cast %170 : vector<1x8x512xf32> to vector<8x512xf32>
    %172 = arith.truncf %168 : vector<8x128xf32> to vector<8x128xbf16>
    %cst_48 = arith.constant dense<0.000000e+00> : vector<8x512xf32>
    %173 = tpu.matmul %172, %11, %cst_48 {dimension_numbers = #tpu.dot_dimension_numbers<[1], [0], [0], [1], [0, 0, 1, 1], [], []>} : vector<8x128xbf16>, vector<128x512xbf16>, vector<8x512xf32> -> vector<8x512xf32>
    %174 = arith.addf %171, %173 : vector<8x512xf32>
    %175 = vector.extract_strided_slice %174 {offsets = [0, 0], sizes = [8, 128], strides = [1, 1]} : vector<8x512xf32> to vector<8x128xf32>
    %176 = arith.negf %175 : vector<8x128xf32>
    %177 = math.exp %176 : vector<8x128xf32>
    %cst_49 = arith.constant 1.000000e+00 : f32
    %178 = vector.broadcast %cst_49 : f32 to vector<8x128xf32>
    %179 = arith.addf %178, %177 : vector<8x128xf32>
    %180 = arith.divf %178, %179 : vector<8x128xf32>
    %181 = vector.extract_strided_slice %174 {offsets = [0, 128], sizes = [8, 128], strides = [1, 1]} : vector<8x512xf32> to vector<8x128xf32>
    %182 = arith.negf %181 : vector<8x128xf32>
    %183 = math.exp %182 : vector<8x128xf32>
    %cst_50 = arith.constant 1.000000e+00 : f32
    %184 = vector.broadcast %cst_50 : f32 to vector<8x128xf32>
    %185 = arith.addf %184, %183 : vector<8x128xf32>
    %186 = arith.divf %184, %185 : vector<8x128xf32>
    %187 = vector.extract_strided_slice %174 {offsets = [0, 256], sizes = [8, 128], strides = [1, 1]} : vector<8x512xf32> to vector<8x128xf32>
    %188 = math.tanh %187 : vector<8x128xf32>
    %189 = vector.extract_strided_slice %174 {offsets = [0, 384], sizes = [8, 128], strides = [1, 1]} : vector<8x512xf32> to vector<8x128xf32>
    %190 = arith.negf %189 : vector<8x128xf32>
    %191 = math.exp %190 : vector<8x128xf32>
    %cst_51 = arith.constant 1.000000e+00 : f32
    %192 = vector.broadcast %cst_51 : f32 to vector<8x128xf32>
    %193 = arith.addf %192, %191 : vector<8x128xf32>
    %194 = arith.divf %192, %193 : vector<8x128xf32>
    %195 = arith.mulf %186, %166 : vector<8x128xf32>
    %196 = arith.mulf %180, %188 : vector<8x128xf32>
    %197 = arith.addf %195, %196 : vector<8x128xf32>
    %198 = math.tanh %197 : vector<8x128xf32>
    %199 = arith.mulf %194, %198 : vector<8x128xf32>
    %c6_i32 = arith.constant 6 : i32
    %200 = arith.index_cast %c6_i32 : i32 to index
    %c0_52 = arith.constant 0 : index
    %c0_53 = arith.constant 0 : index
    %201 = vector.load %arg8[%200, %c0_52, %c0_53] : memref<8x8x512xf32, #tpu.memory_space<vmem>>, vector<1x8x512xf32>
    %202 = vector.shape_cast %201 : vector<1x8x512xf32> to vector<8x512xf32>
    %203 = arith.truncf %199 : vector<8x128xf32> to vector<8x128xbf16>
    %cst_54 = arith.constant dense<0.000000e+00> : vector<8x512xf32>
    %204 = tpu.matmul %203, %11, %cst_54 {dimension_numbers = #tpu.dot_dimension_numbers<[1], [0], [0], [1], [0, 0, 1, 1], [], []>} : vector<8x128xbf16>, vector<128x512xbf16>, vector<8x512xf32> -> vector<8x512xf32>
    %205 = arith.addf %202, %204 : vector<8x512xf32>
    %206 = vector.extract_strided_slice %205 {offsets = [0, 0], sizes = [8, 128], strides = [1, 1]} : vector<8x512xf32> to vector<8x128xf32>
    %207 = arith.negf %206 : vector<8x128xf32>
    %208 = math.exp %207 : vector<8x128xf32>
    %cst_55 = arith.constant 1.000000e+00 : f32
    %209 = vector.broadcast %cst_55 : f32 to vector<8x128xf32>
    %210 = arith.addf %209, %208 : vector<8x128xf32>
    %211 = arith.divf %209, %210 : vector<8x128xf32>
    %212 = vector.extract_strided_slice %205 {offsets = [0, 128], sizes = [8, 128], strides = [1, 1]} : vector<8x512xf32> to vector<8x128xf32>
    %213 = arith.negf %212 : vector<8x128xf32>
    %214 = math.exp %213 : vector<8x128xf32>
    %cst_56 = arith.constant 1.000000e+00 : f32
    %215 = vector.broadcast %cst_56 : f32 to vector<8x128xf32>
    %216 = arith.addf %215, %214 : vector<8x128xf32>
    %217 = arith.divf %215, %216 : vector<8x128xf32>
    %218 = vector.extract_strided_slice %205 {offsets = [0, 256], sizes = [8, 128], strides = [1, 1]} : vector<8x512xf32> to vector<8x128xf32>
    %219 = math.tanh %218 : vector<8x128xf32>
    %220 = vector.extract_strided_slice %205 {offsets = [0, 384], sizes = [8, 128], strides = [1, 1]} : vector<8x512xf32> to vector<8x128xf32>
    %221 = arith.negf %220 : vector<8x128xf32>
    %222 = math.exp %221 : vector<8x128xf32>
    %cst_57 = arith.constant 1.000000e+00 : f32
    %223 = vector.broadcast %cst_57 : f32 to vector<8x128xf32>
    %224 = arith.addf %223, %222 : vector<8x128xf32>
    %225 = arith.divf %223, %224 : vector<8x128xf32>
    %226 = arith.mulf %217, %197 : vector<8x128xf32>
    %227 = arith.mulf %211, %219 : vector<8x128xf32>
    %228 = arith.addf %226, %227 : vector<8x128xf32>
    %229 = math.tanh %228 : vector<8x128xf32>
    %230 = arith.mulf %225, %229 : vector<8x128xf32>
    %c7_i32 = arith.constant 7 : i32
    %231 = arith.index_cast %c7_i32 : i32 to index
    %c0_58 = arith.constant 0 : index
    %c0_59 = arith.constant 0 : index
    %232 = vector.load %arg8[%231, %c0_58, %c0_59] : memref<8x8x512xf32, #tpu.memory_space<vmem>>, vector<1x8x512xf32>
    %233 = vector.shape_cast %232 : vector<1x8x512xf32> to vector<8x512xf32>
    %234 = arith.truncf %230 : vector<8x128xf32> to vector<8x128xbf16>
    %cst_60 = arith.constant dense<0.000000e+00> : vector<8x512xf32>
    %235 = tpu.matmul %234, %11, %cst_60 {dimension_numbers = #tpu.dot_dimension_numbers<[1], [0], [0], [1], [0, 0, 1, 1], [], []>} : vector<8x128xbf16>, vector<128x512xbf16>, vector<8x512xf32> -> vector<8x512xf32>
    %236 = arith.addf %233, %235 : vector<8x512xf32>
    %237 = vector.extract_strided_slice %236 {offsets = [0, 0], sizes = [8, 128], strides = [1, 1]} : vector<8x512xf32> to vector<8x128xf32>
    %238 = arith.negf %237 : vector<8x128xf32>
    %239 = math.exp %238 : vector<8x128xf32>
    %cst_61 = arith.constant 1.000000e+00 : f32
    %240 = vector.broadcast %cst_61 : f32 to vector<8x128xf32>
    %241 = arith.addf %240, %239 : vector<8x128xf32>
    %242 = arith.divf %240, %241 : vector<8x128xf32>
    %243 = vector.extract_strided_slice %236 {offsets = [0, 128], sizes = [8, 128], strides = [1, 1]} : vector<8x512xf32> to vector<8x128xf32>
    %244 = arith.negf %243 : vector<8x128xf32>
    %245 = math.exp %244 : vector<8x128xf32>
    %cst_62 = arith.constant 1.000000e+00 : f32
    %246 = vector.broadcast %cst_62 : f32 to vector<8x128xf32>
    %247 = arith.addf %246, %245 : vector<8x128xf32>
    %248 = arith.divf %246, %247 : vector<8x128xf32>
    %249 = vector.extract_strided_slice %236 {offsets = [0, 256], sizes = [8, 128], strides = [1, 1]} : vector<8x512xf32> to vector<8x128xf32>
    %250 = math.tanh %249 : vector<8x128xf32>
    %251 = vector.extract_strided_slice %236 {offsets = [0, 384], sizes = [8, 128], strides = [1, 1]} : vector<8x512xf32> to vector<8x128xf32>
    %252 = arith.negf %251 : vector<8x128xf32>
    %253 = math.exp %252 : vector<8x128xf32>
    %cst_63 = arith.constant 1.000000e+00 : f32
    %254 = vector.broadcast %cst_63 : f32 to vector<8x128xf32>
    %255 = arith.addf %254, %253 : vector<8x128xf32>
    %256 = arith.divf %254, %255 : vector<8x128xf32>
    %257 = arith.mulf %248, %228 : vector<8x128xf32>
    %258 = arith.mulf %242, %250 : vector<8x128xf32>
    %259 = arith.addf %257, %258 : vector<8x128xf32>
    %260 = math.tanh %259 : vector<8x128xf32>
    %261 = arith.mulf %256, %260 : vector<8x128xf32>
    %c8_i32 = arith.constant 8 : i32
    %c0_64 = arith.constant 0 : index
    %c0_65 = arith.constant 0 : index
    %262 = vector.load %arg9[%c0_64, %c0_65] : memref<8x128xf32, #tpu.memory_space<vmem>>, vector<8x128xf32>
    tpu.vector_store %arg9[%c0_64, %c0_65], %261 {strides = array<i32>} : memref<8x128xf32, #tpu.memory_space<vmem>>, vector<8x128xf32>,
    %c0_66 = arith.constant 0 : index
    %c0_67 = arith.constant 0 : index
    %263 = vector.load %arg10[%c0_66, %c0_67] : memref<8x128xf32, #tpu.memory_space<vmem>>, vector<8x128xf32>
    tpu.vector_store %arg10[%c0_66, %c0_67], %259 {strides = array<i32>} : memref<8x128xf32, #tpu.memory_space<vmem>>, vector<8x128xf32>,
    %c0_i32_68 = arith.constant 0 : i32
    %264 = arith.cmpi eq, %arg0, %c0_i32_68 : i32
    %265 = arith.extui %264 : i1 to i32
    %c0_i32_69 = arith.constant 0 : i32
    %266 = arith.cmpi ne, %265, %c0_i32_69 : i32
    scf.if %266 {
      %cst_70 = arith.constant 0.000000e+00 : f32
      %267 = vector.broadcast %cst_70 : f32 to vector<8x128xf32>
      %268 = arith.maximumf %261, %267 : vector<8x128xf32>
      %269 = arith.truncf %268 : vector<8x128xf32> to vector<8x128xbf16>
      %c0_71 = arith.constant 0 : index
      %c0_72 = arith.constant 0 : index
      %270 = vector.load %arg5[%c0_71, %c0_72] : memref<128x128xbf16, #tpu.memory_space<vmem>>, vector<128x128xbf16>
      %cst_73 = arith.constant dense<0.000000e+00> : vector<8x128xf32>
      %271 = tpu.matmul %269, %270, %cst_73 {dimension_numbers = #tpu.dot_dimension_numbers<[1], [0], [0], [1], [0, 0, 1, 1], [], []>} : vector<8x128xbf16>, vector<128x128xbf16>, vector<8x128xf32> -> vector<8x128xf32>
      %c0_74 = arith.constant 0 : index
      %c0_75 = arith.constant 0 : index
      %272 = vector.load %arg6[%c0_74, %c0_75] : memref<1x128xf32, #tpu.memory_space<vmem>>, vector<1x128xf32>
      %273 = vector.broadcast %272 : vector<1x128xf32> to vector<8x128xf32>
      %274 = arith.addf %271, %273 : vector<8x128xf32>
      %cst_76 = arith.constant dense<0xFF800000> : vector<8xf32>
      %275 = vector.multi_reduction <maximumf>, %274, %cst_76 [1] : vector<8x128xf32> to vector<8xf32>
      %276 = vector.shape_cast %275 : vector<8xf32> to vector<8x1xf32>
      %277 = vector.broadcast %276 : vector<8x1xf32> to vector<8x128xf32>
      %278 = arith.subf %274, %277 : vector<8x128xf32>
      %279 = math.exp %278 : vector<8x128xf32>
      %cst_77 = arith.constant dense<0.000000e+00> : vector<8xf32>
      %280 = vector.multi_reduction <add>, %279, %cst_77 [1] : vector<8x128xf32> to vector<8xf32>
      %281 = vector.shape_cast %280 : vector<8xf32> to vector<8x1xf32>
      %282 = tpu.reciprocal %281 {approx = true} : vector<8x1xf32> -> vector<8x1xf32>
      %283 = vector.broadcast %282 : vector<8x1xf32> to vector<8x128xf32>
      %284 = arith.mulf %279, %283 : vector<8x128xf32>
      %c0_78 = arith.constant 0 : index
      %c0_79 = arith.constant 0 : index
      %285 = vector.load %arg7[%c0_78, %c0_79] : memref<8x128xf32, #tpu.memory_space<vmem>>, vector<8x128xf32>
      tpu.vector_store %arg7[%c0_78, %c0_79], %284 {strides = array<i32>} : memref<8x128xf32, #tpu.memory_space<vmem>>, vector<8x128xf32>,
    } else {
    }
    return
  }
  func.func @transform_0(%arg0: i32) -> (i32, i32) {
    %c0_i32 = arith.constant 0 : i32
    %c0_i32_0 = arith.constant 0 : i32
    return %arg0, %c0_i32 : i32, i32
  }
  func.func @transform_1(%arg0: i32) -> (i32, i32) {
    %c0_i32 = arith.constant 0 : i32
    %c0_i32_0 = arith.constant 0 : i32
    %c0_i32_1 = arith.constant 0 : i32
    return %c0_i32, %c0_i32_0 : i32, i32
  }
  func.func @transform_2(%arg0: i32) -> (i32, i32) {
    %c0_i32 = arith.constant 0 : i32
    %c0_i32_0 = arith.constant 0 : i32
    %c0_i32_1 = arith.constant 0 : i32
    return %c0_i32, %c0_i32_0 : i32, i32
  }
  func.func @transform_3(%arg0: i32) -> (i32, i32) {
    %c0_i32 = arith.constant 0 : i32
    %c0_i32_0 = arith.constant 0 : i32
    %c0_i32_1 = arith.constant 0 : i32
    return %c0_i32, %c0_i32_0 : i32, i32
  }
  func.func @transform_4(%arg0: i32) -> (i32, i32) {
    %c0_i32 = arith.constant 0 : i32
    %c0_i32_0 = arith.constant 0 : i32
    %c0_i32_1 = arith.constant 0 : i32
    return %c0_i32, %c0_i32_0 : i32, i32
  }
  func.func @transform_5(%arg0: i32) -> (i32, i32) {
    %c0_i32 = arith.constant 0 : i32
    %c0_i32_0 = arith.constant 0 : i32
    %c0_i32_1 = arith.constant 0 : i32
    return %c0_i32, %c0_i32_0 : i32, i32
  }
  func.func @transform_6(%arg0: i32) -> (i32, i32) {
    %c0_i32 = arith.constant 0 : i32
    %c0_i32_0 = arith.constant 0 : i32
    %c0_i32_1 = arith.constant 0 : i32
    return %c0_i32, %c0_i32_0 : i32, i32
  }
}

</mosaic_0001>

<bundles_post_ra>
// kernel: lstm1_forward.1
= control target key start
LH: loop header
LB: loop body
LE: loop exit
PB: predicated region body
PF: predicated region fallthrough
CT: control target
= control target key end

     0   :  { %v2717_v1 = vmov 0   ;;  %vm104_vm0 = vcmask 130048   ;;  %v1893_v41 = vmov 0.0|0.0   ;;  %v44_v42 = vlaneseq  ;;  %s2710_s1 = inlined_call_operand.vmem [shape: bf16[16,512], index: 1, kind: input, shape index: {}]   ;;  %s2711_s0 = inlined_call_operand.vmem [shape: bf16[64,16], index: 0, kind: input, shape index: {}]   ;;  %s2712_s2 = inlined_call_operand.vmem [shape: bf16[128,512], index: 2, kind: input, shape index: {}]   ;;  %s2713_s3 = inlined_call_operand.vmem [shape: f32[1,512], index: 3, kind: input, shape index: {}]   ;;  %s2714_s4 = inlined_call_operand.vmem [shape: bf16[128,128], index: 4, kind: input, shape index: {}]   ;;  %s2715_s5 = inlined_call_operand.vmem [shape: f32[1,128], index: 5, kind: input, shape index: {}]   ;;  %s2716_s6 = inlined_call_operand.vmem [shape: f32[8,128], index: 6, kind: output, shape index: {}]  }
   0x1   :  { %v1662_v0 = vld [vmem:[%s2710_s1 + $0x4] ss:$16 sps:$4 sm:$0xff]   ;;  %149 = vmatprep.mubr.bf16.mxu0 %v2717_v1  ;;  %222 = vmatprep.mubr.bf16.mxu1 %v2717_v1  ;;  %v1664_v2 = vld [vmem:[%s2710_s1 + $0xc] ss:$16 sps:$4 sm:$0xff]   ;;  %v1666_v3 = vld [vmem:[%s2710_s1] ss:$16 sps:$4 sm:$0xff]  }
   0x2   :  { %117 = vmatprep.subr.bf16.mxu0 %v1662_v0  ;;  %v1667_v4 = vld [vmem:[%s2710_s1 + $0x8] ss:$16 sps:$4 sm:$0xff]   ;;  %190 = vmatprep.subr.bf16.mxu1 %v1664_v2  ;;  %v1668_v5 = vld [vmem:[%s2711_s0] sm:$0xff]   ;;  %v1956_v7 = vld [vmem:[%s2712_s2 + $0xc] ss:$16 sps:$4 sm:$0xff]   ;;  %v45_v43 = vshrl.u32 %v44_v42, 7 }
   0x3   :  { %118 = vmatpush1.bf16.msra.mxu0 %v1666_v3  ;;  %191 = vmatpush1.bf16.msra.mxu1 %v1667_v4  ;;  %v1951_v6 = vld [vmem:[%s2712_s2 + $0x4] ss:$16 sps:$4 sm:$0xff]   ;;  %v1961_v8 = vld [vmem:[%s2712_s2] ss:$16 sps:$4 sm:$0xff]   ;;  %v1967_v9 = vld [vmem:[%s2712_s2 + $0x8] ss:$16 sps:$4 sm:$0xff]  }
   0x4   :  { %494 = vmatprep.subr.bf16.mxu0 %v1951_v6  ;;  %v1974_v10 = vld [vmem:[%s2712_s2 + $0x24] ss:$16 sps:$4 sm:$0xff]   ;;  %535 = vmatprep.subr.bf16.mxu1 %v1956_v7  ;;  %v1981_v11 = vld [vmem:[%s2712_s2 + $0x2c] ss:$16 sps:$4 sm:$0xff]   ;;  %v1986_v12 = vld [vmem:[%s2712_s2 + $0x20] ss:$16 sps:$4 sm:$0xff]  }
   0x5   :  { %v1991_v13 = vld [vmem:[%s2712_s2 + $0x28] ss:$16 sps:$4 sm:$0xff]   ;;  %v2003_v15 = vld [vmem:[%s2712_s2 + $0x44] ss:$16 sps:$4 sm:$0xff]   ;;  %v2009_v16 = vld [vmem:[%s2712_s2 + $0x4c] ss:$16 sps:$4 sm:$0xff]  }
   0x6   :  { %1556 = vmatmul.mubr.msk.bf16.vlgmr.msra.gmra.mrb[0].mxu0 %vm104_vm0, %v1668_v5  ;;  %1560 = vmatmul.mubr.msk.bf16.vlgmr.msra.gmra.mrb[0].mxu1 %vm104_vm0, %v1668_v5  ;;  %v1681_v14 = vld [vmem:[%s2711_s0 + $0x8] sm:$0xff]   ;;  %v2015_v17 = vld [vmem:[%s2712_s2 + $0x40] ss:$16 sps:$4 sm:$0xff]   ;;  %v2027_v19 = vld [vmem:[%s2712_s2 + $0x64] ss:$16 sps:$4 sm:$0xff]   ;;  %v54_v44 = vsub.s32 2, %v45_v43 }
   0x7   :  { %495 = vmatpush1.bf16.msra.mxu0 %v1961_v8  ;;  %536 = vmatpush1.bf16.msra.mxu1 %v1967_v9  ;;  %v2020_v18 = vld [vmem:[%s2712_s2 + $0x48] ss:$16 sps:$4 sm:$0xff]   ;;  %v2033_v20 = vld [vmem:[%s2712_s2 + $0x6c] ss:$16 sps:$4 sm:$0xff]   ;;  %v2040_v21 = vld [vmem:[%s2712_s2 + $0x60] ss:$16 sps:$4 sm:$0xff]  }
   0x8   :  { %496 = vmatprep.subr.bf16.mxu0 %v1974_v10  ;;  %537 = vmatprep.subr.bf16.mxu1 %v1981_v11  ;;  %v2046_v22 = vld [vmem:[%s2712_s2 + $0x68] ss:$16 sps:$4 sm:$0xff]   ;;  %v2054_v23 = vld [vmem:[%s2712_s2 + $0x84] ss:$16 sps:$4 sm:$0xff]   ;;  %v2061_v24 = vld [vmem:[%s2712_s2 + $0x8c] ss:$16 sps:$4 sm:$0xff]  }
   0x9   :  { %159 = vmatprep.mubr.bf16.mxu0 %v2717_v1  ;;  %232 = vmatprep.mubr.bf16.mxu1 %v2717_v1  ;;  %v1694_v25 = vld [vmem:[%s2711_s0 + $0x10] sm:$0xff]   ;;  %v2077_v27 = vld [vmem:[%s2712_s2 + $0x88] ss:$16 sps:$4 sm:$0xff]   ;;  %v2088_v29 = vld [vmem:[%s2712_s2 + $0xac] ss:$16 sps:$4 sm:$0xff]   ;;  %v58_v45 = vsub.s32 3, %v45_v43 }
   0xa   :  { %v2070_v26 = vld [vmem:[%s2712_s2 + $0x80] ss:$16 sps:$4 sm:$0xff]   ;;  %v2082_v28 = vld [vmem:[%s2712_s2 + $0xa4] ss:$16 sps:$4 sm:$0xff]   ;;  %v2101_v31 = vld [vmem:[%s2712_s2 + $0xa8] ss:$16 sps:$4 sm:$0xff]  }
   0xb   :  { %497 = vmatpush1.bf16.msra.mxu0 %v1986_v12  ;;  %538 = vmatpush1.bf16.msra.mxu1 %v1991_v13  ;;  %v2096_v30 = vld [vmem:[%s2712_s2 + $0xa0] ss:$16 sps:$4 sm:$0xff]   ;;  %v2109_v32 = vld [vmem:[%s2712_s2 + $0xc4] ss:$16 sps:$4 sm:$0xff]   ;;  %v2116_v33 = vld [vmem:[%s2712_s2 + $0xcc] ss:$16 sps:$4 sm:$0xff]  }
   0xc   :  { %498 = vmatprep.subr.bf16.mxu0 %v2003_v15  ;;  %539 = vmatprep.subr.bf16.mxu1 %v2009_v16  ;;  %v1707_v34 = vld [vmem:[%s2711_s0 + $0x18] sm:$0xff]   ;;  %v2125_v35 = vld [vmem:[%s2712_s2 + $0xc0] ss:$16 sps:$4 sm:$0xff]   ;;  %v2137_v37 = vld [vmem:[%s2712_s2 + $0xe4] ss:$16 sps:$4 sm:$0xff]   ;;  %v46_v46 = vsub.s32 0, %v45_v43 }
   0xd   :  { %v2132_v36 = vld [vmem:[%s2712_s2 + $0xc8] ss:$16 sps:$4 sm:$0xff]   ;;  %v2143_v38 = vld [vmem:[%s2712_s2 + $0xec] ss:$16 sps:$4 sm:$0xff]   ;;  %v2151_v39 = vld [vmem:[%s2712_s2 + $0xe0] ss:$16 sps:$4 sm:$0xff]  }
   0xe   :  { %1557 = vmatmul.mubr.msk.bf16.gmra.mrb[4].mxu0 %vm104_vm0, %v1681_v14  ;;  %1561 = vmatmul.mubr.msk.bf16.gmra.mrb[4].mxu1 %vm104_vm0, %v1681_v14  ;;  %v2159_v40 = vld [vmem:[%s2712_s2 + $0xe8] ss:$16 sps:$4 sm:$0xff]   ;;  %v42_v47 = vld [vmem:[%s2713_s3] sm:$0xf]  ;;  %v50_v48 = vsub.s32 1, %v45_v43  ;;  %vm1895_vm1 = vmmov 0  }
   0xf   :  { %499 = vmatpush1.bf16.msra.mxu0 %v2015_v17  ;;  %169 = vmatprep.mubr.bf16.mxu0 %v2717_v1  ;;  %v2204_v49 = vrot.slane %v42_v47, %v54_v44  ;;  %v2210_v52 = vrot.slane %v42_v47, %v58_v45  ;;  %v47_v53 = vrot.slane %v42_v47, %v46_v46 }
  0x10   :  { %540 = vmatpush1.bf16.msra.mxu1 %v2020_v18  ;;  %500 = vmatprep.subr.bf16.mxu0 %v2027_v19  ;;  %v51_v56 = vrot.slane %v42_v47, %v50_v48 }
  0x11   :  { %541 = vmatprep.subr.bf16.mxu1 %v2033_v20  ;;  %242 = vmatprep.mubr.bf16.mxu1 %v2717_v1 }
  0x13   :  { %501 = vmatpush1.bf16.msra.mxu0 %v2040_v21 }
  0x14   :  { %542 = vmatpush1.bf16.msra.mxu1 %v2046_v22  ;;  %502 = vmatprep.subr.bf16.mxu0 %v2054_v23 }
  0x15   :  { %543 = vmatprep.subr.bf16.mxu1 %v2061_v24 }
  0x16   :  { %1558 = vmatmul.mubr.msk.bf16.gmra.mrb[8].mxu0 %vm104_vm0, %v1694_v25  ;;  %1562 = vmatmul.mubr.msk.bf16.gmra.mrb[8].mxu1 %vm104_vm0, %v1694_v25 }
  0x17   :  { %503 = vmatpush1.bf16.msra.mxu0 %v2070_v26  ;;  %179 = vmatprep.mubr.bf16.mxu0 %v2717_v1 }
  0x18   :  { %544 = vmatpush1.bf16.msra.mxu1 %v2077_v27  ;;  %504 = vmatprep.subr.bf16.mxu0 %v2082_v28 }
  0x19   :  { %545 = vmatprep.subr.bf16.mxu1 %v2088_v29  ;;  %252 = vmatprep.mubr.bf16.mxu1 %v2717_v1 }
  0x1b   :  { %505 = vmatpush1.bf16.msra.mxu0 %v2096_v30 }
  0x1c   :  { %546 = vmatpush1.bf16.msra.mxu1 %v2101_v31  ;;  %506 = vmatprep.subr.bf16.mxu0 %v2109_v32 }
  0x1d   :  { %547 = vmatprep.subr.bf16.mxu1 %v2116_v33 }
  0x1e   :  { %1559 = vmatmul.mubr.msk.bf16.gmra.mrb[12].mxu0 %vm104_vm0, %v1707_v34  ;;  %1563 = vmatmul.mubr.msk.bf16.gmra.mrb[12].mxu1 %vm104_vm0, %v1707_v34 }
  0x1f   :  { %507 = vmatpush1.bf16.msra.mxu0 %v2125_v35  ;;  %526 = vmatprep.mubr.bf16.mxu0 %v2717_v1 }
  0x20   :  { %548 = vmatpush1.bf16.msra.mxu1 %v2132_v36  ;;  %508 = vmatprep.subr.bf16.mxu0 %v2137_v37 }
  0x21   :  { %549 = vmatprep.subr.bf16.mxu1 %v2143_v38  ;;  %567 = vmatprep.mubr.bf16.mxu1 %v2717_v1 }
  0x23   :  { %509 = vmatpush1.bf16.msra.mxu0 %v2151_v39 }
  0x24   :  { %550 = vmatpush1.bf16.msra.mxu1 %v2159_v40  ;;  %610 = vmatprep.subr.bf16.mxu0 %v1951_v6 }
  0x25   :  { %651 = vmatprep.subr.bf16.mxu1 %v1956_v7 }
  0x26   :  { %527 = vmatmul.mubr.bf16.vlgmr.msra.gmra.mrb[16].mxu0 %v1893_v41 }
  0x27   :  { %568 = vmatmul.mubr.bf16.vlgmr.msra.gmra.mrb[16].mxu1 %v1893_v41  ;;  %611 = vmatpush1.bf16.msra.mxu0 %v1961_v8 }
  0x28   :  { %652 = vmatpush1.bf16.msra.mxu1 %v1967_v9  ;;  %612 = vmatprep.subr.bf16.mxu0 %v1974_v10 }
  0x29   :  { %653 = vmatprep.subr.bf16.mxu1 %v1981_v11  ;;  %642 = vmatprep.mubr.bf16.mxu0 %v2717_v1 }
  0x2a   :  { %683 = vmatprep.mubr.bf16.mxu1 %v2717_v1 }
  0x2b   :  { %613 = vmatpush1.bf16.msra.mxu0 %v1986_v12 }
  0x2c   :  { %654 = vmatpush1.bf16.msra.mxu1 %v1991_v13  ;;  %614 = vmatprep.subr.bf16.mxu0 %v2003_v15 }
  0x2d   :  { %655 = vmatprep.subr.bf16.mxu1 %v2009_v16 }
  0x2f   :  { %615 = vmatpush1.bf16.msra.mxu0 %v2015_v17 }
  0x30   :  { %656 = vmatpush1.bf16.msra.mxu1 %v2020_v18  ;;  %616 = vmatprep.subr.bf16.mxu0 %v2027_v19 }
  0x31   :  { %657 = vmatprep.subr.bf16.mxu1 %v2033_v20 }
  0x33   :  { %617 = vmatpush1.bf16.msra.mxu0 %v2040_v21 }
  0x34   :  { %658 = vmatpush1.bf16.msra.mxu1 %v2046_v22  ;;  %618 = vmatprep.subr.bf16.mxu0 %v2054_v23 }
  0x35   :  { %659 = vmatprep.subr.bf16.mxu1 %v2061_v24 }
  0x37   :  { %619 = vmatpush1.bf16.msra.mxu0 %v2070_v26 }
  0x38   :  { %660 = vmatpush1.bf16.msra.mxu1 %v2077_v27  ;;  %620 = vmatprep.subr.bf16.mxu0 %v2082_v28 }
  0x39   :  { %661 = vmatprep.subr.bf16.mxu1 %v2088_v29 }
  0x3b   :  { %621 = vmatpush1.bf16.msra.mxu0 %v2096_v30 }
  0x3c   :  { %662 = vmatpush1.bf16.msra.mxu1 %v2101_v31  ;;  %622 = vmatprep.subr.bf16.mxu0 %v2109_v32 }
  0x3d   :  { %663 = vmatprep.subr.bf16.mxu1 %v2116_v33 }
  0x3f   :  { %623 = vmatpush1.bf16.msra.mxu0 %v2125_v35 }
  0x40   :  { %664 = vmatpush1.bf16.msra.mxu1 %v2132_v36  ;;  %624 = vmatprep.subr.bf16.mxu0 %v2137_v37 }
  0x41   :  { %665 = vmatprep.subr.bf16.mxu1 %v2143_v38 }
  0x43   :  { %625 = vmatpush1.bf16.msra.mxu0 %v2151_v39 }
  0x44   :  { %666 = vmatpush1.bf16.msra.mxu1 %v2159_v40  ;;  %726 = vmatprep.subr.bf16.mxu0 %v1951_v6 }
  0x45   :  { %767 = vmatprep.subr.bf16.mxu1 %v1956_v7 }
  0xd9   :  { %v2206_v50 = vpop.f32.mrb[0].mxu0  ;;  %v2208_v51 = vpop.f32.mrb[0].mxu1 }
  0xda   :  { %v153_v54 = vpop.f32.mrb[1].mxu0  ;;  %v226_v55 = vpop.f32.mrb[1].mxu1 }
  0xdb   :  { %v155_v57 = vpop.f32.mrb[2].mxu0  ;;  %v228_v58 = vpop.f32.mrb[2].mxu1 }
  0xdc   :  { %v2212_v59 = vadd.f32 %v155_v57, %v47_v53  ;;  %v157_v60 = vpop.f32.mrb[3].mxu0  ;;  %v2215_v61 = vadd.f32 %v228_v58, %v2204_v49  ;;  %v230_v62 = vpop.f32.mrb[3].mxu1 }
  0xdd   :  { %v2217_v63 = vadd.f32 %v157_v60, %v51_v56  ;;  %v2220_v0 = vadd.f32 %v230_v62, %v2210_v52 }
  0xe1   :  { %v161_v2 = vpop.f32.mrb[4].mxu0  ;;  %v234_v3 = vpop.f32.mrb[4].mxu1 }
  0xe2   :  { %v2222_v4 = vadd.f32 %v161_v2, %v47_v53  ;;  %v163_v5 = vpop.f32.mrb[5].mxu0  ;;  %v2225_v14 = vadd.f32 %v234_v3, %v2204_v49  ;;  %v236_v25 = vpop.f32.mrb[5].mxu1 }
  0xe3   :  { %v2227_v34 = vadd.f32 %v163_v5, %v51_v56  ;;  %v165_v41 = vpop.f32.mrb[6].mxu0  ;;  %v2230_v42 = vadd.f32 %v236_v25, %v2210_v52  ;;  %v238_v43 = vpop.f32.mrb[6].mxu1 }
  0xe4   :  { %v2232_v44 = vadd.f32 %v165_v41, %v47_v53  ;;  %v167_v45 = vpop.f32.mrb[7].mxu0  ;;  %v2235_v46 = vadd.f32 %v238_v43, %v2204_v49  ;;  %v240_v47 = vpop.f32.mrb[7].mxu1 }
  0xe5   :  { %2719 = vst [vmem:[#allocation5_spill] sm:$0xff] %v2230_v42  ;;  %v2237_v48 = vadd.f32 %v167_v45, %v51_v56  ;;  %v2240_v57 = vadd.f32 %v240_v47, %v2210_v52 }
  0xe6   :  { %2720 = vst [vmem:[#allocation6_spill] sm:$0xff] %v2232_v44  ;;  %2721 = vst [vmem:[#allocation7_spill] sm:$0xff] %v2235_v46 }
  0xe7   :  { %2722 = vst [vmem:[#allocation8_spill] sm:$0xff] %v2237_v48  ;;  %2723 = vst [vmem:[#allocation9_spill] sm:$0xff] %v2240_v57 }
  0xe9   :  { %v171_v58 = vpop.f32.mrb[8].mxu0  ;;  %v244_v60 = vpop.f32.mrb[8].mxu1 }
  0xea   :  { %v2242_v62 = vadd.f32 %v171_v58, %v47_v53  ;;  %v173_v2 = vpop.f32.mrb[9].mxu0  ;;  %v2245_v3 = vadd.f32 %v244_v60, %v2204_v49  ;;  %v246_v5 = vpop.f32.mrb[9].mxu1 }
  0xeb   :  { %v2247_v25 = vadd.f32 %v173_v2, %v51_v56  ;;  %v175_v41 = vpop.f32.mrb[10].mxu0  ;;  %v2250_v43 = vadd.f32 %v246_v5, %v2210_v52  ;;  %v248_v45 = vpop.f32.mrb[10].mxu1 }
  0xec   :  { %2724 = vst [vmem:[#allocation10_spill] sm:$0xff] %v2242_v62  ;;  %2725 = vst [vmem:[#allocation11_spill] sm:$0xff] %v2245_v3  ;;  %v2252_v1 = vadd.f32 %v175_v41, %v47_v53  ;;  %v177_v47 = vpop.f32.mrb[11].mxu0  ;;  %v2255_v57 = vadd.f32 %v248_v45, %v2204_v49  ;;  %v250_v58 = vpop.f32.mrb[11].mxu1 }
  0xed   :  { %2726 = vst [vmem:[#allocation12_spill] sm:$0xff] %v2247_v25  ;;  %2727 = vst [vmem:[#allocation13_spill] sm:$0xff] %v2250_v43  ;;  %v2257_v62 = vadd.f32 %v177_v47, %v51_v56  ;;  %v2260_v60 = vadd.f32 %v250_v58, %v2210_v52 }
  0xee   :  { %2728 = vst [vmem:[#allocation14_spill] sm:$0xff] %v2252_v1  ;;  %2729 = vst [vmem:[#allocation15_spill] sm:$0xff] %v2255_v57 }
  0xef   :  { %2730 = vst [vmem:[#allocation16_spill] sm:$0xff] %v2257_v62  ;;  %2731 = vst [vmem:[#allocation17_spill] sm:$0xff] %v2260_v60 }
  0xf1   :  { %v181_v3 = vpop.f32.mrb[12].mxu0  ;;  %v254_v2 = vpop.f32.mrb[12].mxu1 }
  0xf2   :  { %v2262_v25 = vadd.f32 %v181_v3, %v47_v53  ;;  %v183_v48 = vpop.f32.mrb[13].mxu0  ;;  %v2265_v5 = vadd.f32 %v254_v2, %v2204_v49  ;;  %v256_v41 = vpop.f32.mrb[13].mxu1 }
  0xf3   :  { %v2267_v1 = vadd.f32 %v183_v48, %v51_v56  ;;  %v185_v43 = vpop.f32.mrb[14].mxu0  ;;  %v2270_v45 = vadd.f32 %v256_v41, %v2210_v52  ;;  %v258_v47 = vpop.f32.mrb[14].mxu1  ;;  %v152_v48 = vadd.f32 %v2206_v50, %v47_v53  ;;  %v225_v41 = vadd.f32 %v2208_v51, %v2204_v49 }
  0xf4   :  { %2732 = vst [vmem:[#allocation18_spill] sm:$0xff] %v2262_v25  ;;  %2733 = vst [vmem:[#allocation19_spill] sm:$0xff] %v2265_v5  ;;  %v2272_v62 = vadd.f32 %v185_v43, %v47_v53  ;;  %v187_v58 = vpop.f32.mrb[15].mxu0  ;;  %v2275_v60 = vadd.f32 %v258_v47, %v2204_v49  ;;  %v260_v3 = vpop.f32.mrb[15].mxu1  ;;  %v227_v43 = vadd.f32 %v226_v55, %v2210_v52 }
  0xf5   :  { %2734 = vst [vmem:[#allocation20_spill] sm:$0xff] %v2267_v1  ;;  %2735 = vst [vmem:[#allocation21_spill] sm:$0xff] %v2270_v45  ;;  %v2277_v25 = vadd.f32 %v187_v58, %v51_v56  ;;  %v2280_v2 = vadd.f32 %v260_v3, %v2210_v52  ;;  %v154_v1 = vadd.f32 %v153_v54, %v51_v56 }
  0xf6   :  { %2736 = vst [vmem:[#allocation22_spill] sm:$0xff] %v2272_v62  ;;  %2737 = vst [vmem:[#allocation23_spill] sm:$0xff] %v2275_v60 }
  0xf7   :  { %2738 = vst [vmem:[#allocation24_spill] sm:$0xff] %v2277_v25  ;;  %2739 = vst [vmem:[#allocation25_spill] sm:$0xff] %v2280_v2 }
  0xf9   :  { %v528_v45 = vpop.f32.mrb[16].mxu0 }
  0xfa   :  { %v576_v62 = vadd.f32 %v528_v45, %v152_v48  ;;  %v569_v5 = vpop.f32.mrb[16].mxu1  ;;  %v530_v57 = vpop.f32.mrb[17].mxu0 }
  0xfb   :  { %v578_v47 = vadd.f32 %v569_v5, %v225_v41  ;;  %v577_v60 = vadd.f32 %v530_v57, %v154_v1  ;;  %v571_v46 = vpop.f32.mrb[17].mxu1  ;;  %v532_v58 = vpop.f32.mrb[18].mxu0 }
  0xfc   :  { %v1596_v25 = vmul.f32 -1.442695, %v576_v62  ;;  %v579_v44 = vadd.f32 %v571_v46, %v227_v43  ;;  %v533_v3 = vpop.f32.mrb[19].mxu0  ;;  %v573_v2 = vpop.f32.mrb[18].mxu1 }
  0xfd   :  { %v1597_v42 = vmul.f32 -1.442695, %v577_v60  ;;  %v574_v50 = vpop.f32.mrb[19].mxu1  ;;  %v2740_v2 = vmov 0  }
  0xfe   :  { %1728 = vpow2.f32 %v1596_v25  ;;  %v1598_v53 = vmul.f32 -1.442695, %v579_v44 }
  0xff   :  { %1730 = vpow2.f32 %v1597_v42 }
 0x100   :  { %1732 = vpow2.f32 %v1598_v53 }
 0x101   :  { %1734 = vtanh.f32 %v578_v47 }
 0x108   :  { %v1729_v49 = vpop.eup %1728 }
 0x109   :  { %v1731_v51 = vpop.eup %1730  ;;  %v583_v54 = vadd.f32 1.0, %v1729_v49 }
 0x10a   :  { %v589_v52 = vadd.f32 1.0, %v1731_v51  ;;  %v1733_v1 = vpop.eup %1732 }
 0x10b   :  { %1736 = vrcp.f32 %v583_v54  ;;  %v1735_v55 = vpop.eup %1734  ;;  %v596_v62 = vadd.f32 1.0, %v1733_v1 }
 0x10c   :  { %1738 = vrcp.f32 %v589_v52 }
 0x10d   :  { %1740 = vrcp.f32 %v596_v62 }
 0x115   :  { %v1737_v56 = vpop.eup %1736 }
 0x116   :  { %v1739_v57 = vpop.eup %1738  ;;  %v600_v46 = vmul.f32 %v1737_v56, %v1735_v55 }
 0x117   :  { %v599_v5 = vmul.f32 0.0, %v1739_v57  ;;  %v1741_v42 = vpop.eup %1740 }
 0x119   :  { %v2286_v60 = vadd.f32 %v600_v46, %v599_v5 }
 0x11b   :  { %1742 = vtanh.f32 %v2286_v60 }
 0x125   :  { %v1743_v44 = vpop.eup %1742 }
 0x126   :  { %v603_v25 = vmul.f32 %v1743_v44, %v1741_v42 }
 0x128   :  { %v609_v45 = vpack.c.bf16 %v603_v25, %v603_v25 }
 0x12a   :  { %643 = vmatmul.mubr.bf16.vlgmr.msra.gmra.mrb[20].mxu0 %v609_v45  ;;  %684 = vmatmul.mubr.bf16.vlgmr.msra.gmra.mrb[20].mxu1 %v609_v45 }
 0x12b   :  { %727 = vmatpush1.bf16.msra.mxu0 %v1961_v8  ;;  %768 = vmatpush1.bf16.msra.mxu1 %v1967_v9 }
 0x12c   :  { %728 = vmatprep.subr.bf16.mxu0 %v1974_v10  ;;  %769 = vmatprep.subr.bf16.mxu1 %v1981_v11 }
 0x12d   :  { %758 = vmatprep.mubr.bf16.mxu0 %v2740_v2  ;;  %799 = vmatprep.mubr.bf16.mxu1 %v2740_v2 }
 0x12f   :  { %729 = vmatpush1.bf16.msra.mxu0 %v1986_v12  ;;  %770 = vmatpush1.bf16.msra.mxu1 %v1991_v13 }
 0x130   :  { %730 = vmatprep.subr.bf16.mxu0 %v2003_v15  ;;  %771 = vmatprep.subr.bf16.mxu1 %v2009_v16 }
 0x133   :  { %731 = vmatpush1.bf16.msra.mxu0 %v2015_v17  ;;  %772 = vmatpush1.bf16.msra.mxu1 %v2020_v18 }
 0x134   :  { %732 = vmatprep.subr.bf16.mxu0 %v2027_v19  ;;  %773 = vmatprep.subr.bf16.mxu1 %v2033_v20 }
 0x137   :  { %733 = vmatpush1.bf16.msra.mxu0 %v2040_v21  ;;  %774 = vmatpush1.bf16.msra.mxu1 %v2046_v22 }
 0x138   :  { %734 = vmatprep.subr.bf16.mxu0 %v2054_v23  ;;  %775 = vmatprep.subr.bf16.mxu1 %v2061_v24 }
 0x13b   :  { %735 = vmatpush1.bf16.msra.mxu0 %v2070_v26  ;;  %776 = vmatpush1.bf16.msra.mxu1 %v2077_v27 }
 0x13c   :  { %736 = vmatprep.subr.bf16.mxu0 %v2082_v28  ;;  %777 = vmatprep.subr.bf16.mxu1 %v2088_v29 }
 0x13f   :  { %737 = vmatpush1.bf16.msra.mxu0 %v2096_v30  ;;  %778 = vmatpush1.bf16.msra.mxu1 %v2101_v31 }
 0x140   :  { %738 = vmatprep.subr.bf16.mxu0 %v2109_v32  ;;  %779 = vmatprep.subr.bf16.mxu1 %v2116_v33 }
 0x143   :  { %739 = vmatpush1.bf16.msra.mxu0 %v2125_v35  ;;  %780 = vmatpush1.bf16.msra.mxu1 %v2132_v36 }
 0x144   :  { %740 = vmatprep.subr.bf16.mxu0 %v2137_v37  ;;  %781 = vmatprep.subr.bf16.mxu1 %v2143_v38 }
 0x147   :  { %741 = vmatpush1.bf16.msra.mxu0 %v2151_v39  ;;  %782 = vmatpush1.bf16.msra.mxu1 %v2159_v40 }
 0x148   :  { %842 = vmatprep.subr.bf16.mxu0 %v1951_v6  ;;  %883 = vmatprep.subr.bf16.mxu1 %v1956_v7 }
 0x1fd   :  { %v644_v48 = vpop.f32.mrb[20].mxu0  ;;  %v685_v41 = vpop.f32.mrb[20].mxu1 }
 0x1fe   :  { %v692_v43 = vadd.f32 %v644_v48, %v2212_v59  ;;  %v694_v47 = vadd.f32 %v685_v41, %v2215_v61  ;;  %v646_v58 = vpop.f32.mrb[21].mxu0  ;;  %v687_v3 = vpop.f32.mrb[21].mxu1 }
 0x1ff   :  { %v693_v50 = vadd.f32 %v646_v58, %v2217_v63  ;;  %v695_v53 = vadd.f32 %v687_v3, %v2220_v0  ;;  %v648_v49 = vpop.f32.mrb[22].mxu0  ;;  %v689_v51 = vpop.f32.mrb[22].mxu1 }
 0x200   :  { %v1599_v54 = vmul.f32 -1.442695, %v692_v43  ;;  %v649_v52 = vpop.f32.mrb[23].mxu0  ;;  %v690_v1 = vpop.f32.mrb[23].mxu1 }
 0x201   :  { %v1600_v55 = vmul.f32 -1.442695, %v693_v50  ;;  %v1601_v56 = vmul.f32 -1.442695, %v695_v53 }
 0x202   :  { %1744 = vpow2.f32 %v1599_v54  ;;  %v2741_v54 = vld [vmem:[#allocation5_spill] sm:$0xff] }
 0x203   :  { %1746 = vpow2.f32 %v1600_v55 }
 0x204   :  { %1748 = vpow2.f32 %v1601_v56 }
 0x205   :  { %1750 = vtanh.f32 %v694_v47 }
 0x20c   :  { %v1745_v57 = vpop.eup %1744 }
 0x20d   :  { %v1747_v46 = vpop.eup %1746  ;;  %v699_v59 = vadd.f32 1.0, %v1745_v57 }
 0x20e   :  { %v705_v61 = vadd.f32 1.0, %v1747_v46  ;;  %v1749_v63 = vpop.eup %1748 }
 0x20f   :  { %1752 = vrcp.f32 %v699_v59  ;;  %v1751_v62 = vpop.eup %1750  ;;  %v712_v44 = vadd.f32 1.0, %v1749_v63 }
 0x210   :  { %1754 = vrcp.f32 %v705_v61 }
 0x211   :  { %1756 = vrcp.f32 %v712_v44 }
 0x219   :  { %v1753_v0 = vpop.eup %1752 }
 0x21a   :  { %v1755_v5 = vpop.eup %1754  ;;  %v716_v42 = vmul.f32 %v1753_v0, %v1751_v62 }
 0x21b   :  { %v715_v25 = vmul.f32 %v1755_v5, %v2286_v60  ;;  %v1757_v48 = vpop.eup %1756 }
 0x21d   :  { %v2328_v45 = vadd.f32 %v716_v42, %v715_v25 }
 0x21f   :  { %1758 = vtanh.f32 %v2328_v45 }
 0x229   :  { %v1759_v41 = vpop.eup %1758 }
 0x22a   :  { %v719_v43 = vmul.f32 %v1759_v41, %v1757_v48 }
 0x22c   :  { %v725_v47 = vpack.c.bf16 %v719_v43, %v719_v43 }
 0x22e   :  { %759 = vmatmul.mubr.bf16.vlgmr.msra.gmra.mrb[24].mxu0 %v725_v47  ;;  %800 = vmatmul.mubr.bf16.vlgmr.msra.gmra.mrb[24].mxu1 %v725_v47 }
 0x22f   :  { %843 = vmatpush1.bf16.msra.mxu0 %v1961_v8  ;;  %884 = vmatpush1.bf16.msra.mxu1 %v1967_v9 }
 0x230   :  { %844 = vmatprep.subr.bf16.mxu0 %v1974_v10  ;;  %885 = vmatprep.subr.bf16.mxu1 %v1981_v11 }
 0x231   :  { %874 = vmatprep.mubr.bf16.mxu0 %v2740_v2  ;;  %915 = vmatprep.mubr.bf16.mxu1 %v2740_v2 }
 0x233   :  { %845 = vmatpush1.bf16.msra.mxu0 %v1986_v12  ;;  %886 = vmatpush1.bf16.msra.mxu1 %v1991_v13 }
 0x234   :  { %846 = vmatprep.subr.bf16.mxu0 %v2003_v15  ;;  %887 = vmatprep.subr.bf16.mxu1 %v2009_v16 }
 0x237   :  { %847 = vmatpush1.bf16.msra.mxu0 %v2015_v17  ;;  %888 = vmatpush1.bf16.msra.mxu1 %v2020_v18 }
 0x238   :  { %848 = vmatprep.subr.bf16.mxu0 %v2027_v19  ;;  %889 = vmatprep.subr.bf16.mxu1 %v2033_v20 }
 0x23b   :  { %849 = vmatpush1.bf16.msra.mxu0 %v2040_v21  ;;  %890 = vmatpush1.bf16.msra.mxu1 %v2046_v22 }
 0x23c   :  { %850 = vmatprep.subr.bf16.mxu0 %v2054_v23  ;;  %891 = vmatprep.subr.bf16.mxu1 %v2061_v24 }
 0x23f   :  { %851 = vmatpush1.bf16.msra.mxu0 %v2070_v26  ;;  %892 = vmatpush1.bf16.msra.mxu1 %v2077_v27 }
 0x240   :  { %852 = vmatprep.subr.bf16.mxu0 %v2082_v28  ;;  %893 = vmatprep.subr.bf16.mxu1 %v2088_v29 }
 0x243   :  { %853 = vmatpush1.bf16.msra.mxu0 %v2096_v30  ;;  %894 = vmatpush1.bf16.msra.mxu1 %v2101_v31 }
 0x244   :  { %854 = vmatprep.subr.bf16.mxu0 %v2109_v32  ;;  %895 = vmatprep.subr.bf16.mxu1 %v2116_v33 }
 0x247   :  { %855 = vmatpush1.bf16.msra.mxu0 %v2125_v35  ;;  %896 = vmatpush1.bf16.msra.mxu1 %v2132_v36 }
 0x248   :  { %856 = vmatprep.subr.bf16.mxu0 %v2137_v37  ;;  %897 = vmatprep.subr.bf16.mxu1 %v2143_v38 }
 0x24b   :  { %857 = vmatpush1.bf16.msra.mxu0 %v2151_v39  ;;  %898 = vmatpush1.bf16.msra.mxu1 %v2159_v40 }
 0x24c   :  { %958 = vmatprep.subr.bf16.mxu0 %v1951_v6  ;;  %999 = vmatprep.subr.bf16.mxu1 %v1956_v7 }
 0x301   :  { %v760_v60 = vpop.f32.mrb[24].mxu0  ;;  %v801_v58 = vpop.f32.mrb[24].mxu1 }
 0x302   :  { %v808_v3 = vadd.f32 %v760_v60, %v2222_v4  ;;  %v810_v50 = vadd.f32 %v801_v58, %v2225_v14  ;;  %v762_v53 = vpop.f32.mrb[25].mxu0  ;;  %v803_v49 = vpop.f32.mrb[25].mxu1 }
 0x303   :  { %v809_v51 = vadd.f32 %v762_v53, %v2227_v34  ;;  %v811_v52 = vadd.f32 %v803_v49, %v2741_v54  ;;  %v764_v1 = vpop.f32.mrb[26].mxu0  ;;  %v805_v55 = vpop.f32.mrb[26].mxu1  ;;  %v2743_v49 = vld [vmem:[#allocation7_spill] sm:$0xff] }
 0x304   :  { %v1602_v56 = vmul.f32 -1.442695, %v808_v3  ;;  %v765_v57 = vpop.f32.mrb[27].mxu0  ;;  %v806_v46 = vpop.f32.mrb[27].mxu1  ;;  %v2744_v1 = vld [vmem:[#allocation8_spill] sm:$0xff] }
 0x305   :  { %v1603_v59 = vmul.f32 -1.442695, %v809_v51  ;;  %v1604_v61 = vmul.f32 -1.442695, %v811_v52 }
 0x306   :  { %1760 = vpow2.f32 %v1602_v56  ;;  %v2745_v56 = vld [vmem:[#allocation9_spill] sm:$0xff] }
 0x307   :  { %1762 = vpow2.f32 %v1603_v59 }
 0x308   :  { %1764 = vpow2.f32 %v1604_v61 }
 0x309   :  { %1766 = vtanh.f32 %v810_v50  ;;  %v2742_v50 = vld [vmem:[#allocation6_spill] sm:$0xff] }
 0x310   :  { %v1761_v63 = vpop.eup %1760 }
 0x311   :  { %v1763_v62 = vpop.eup %1762  ;;  %v815_v4 = vadd.f32 1.0, %v1761_v63 }
 0x312   :  { %v821_v14 = vadd.f32 1.0, %v1763_v62  ;;  %v1765_v34 = vpop.eup %1764 }
 0x313   :  { %1768 = vrcp.f32 %v815_v4  ;;  %v1767_v0 = vpop.eup %1766  ;;  %v828_v25 = vadd.f32 1.0, %v1765_v34 }
 0x314   :  { %1770 = vrcp.f32 %v821_v14 }
 0x315   :  { %1772 = vrcp.f32 %v828_v25 }
 0x31d   :  { %v1769_v5 = vpop.eup %1768 }
 0x31e   :  { %v1771_v42 = vpop.eup %1770  ;;  %v832_v44 = vmul.f32 %v1769_v5, %v1767_v0 }
 0x31f   :  { %v831_v48 = vmul.f32 %v1771_v42, %v2328_v45  ;;  %v1773_v43 = vpop.eup %1772 }
 0x321   :  { %v2370_v41 = vadd.f32 %v832_v44, %v831_v48 }
 0x323   :  { %1774 = vtanh.f32 %v2370_v41 }
 0x32d   :  { %v1775_v47 = vpop.eup %1774 }
 0x32e   :  { %v835_v60 = vmul.f32 %v1775_v47, %v1773_v43 }
 0x330   :  { %v841_v58 = vpack.c.bf16 %v835_v60, %v835_v60 }
 0x332   :  { %875 = vmatmul.mubr.bf16.vlgmr.msra.gmra.mrb[28].mxu0 %v841_v58  ;;  %916 = vmatmul.mubr.bf16.vlgmr.msra.gmra.mrb[28].mxu1 %v841_v58 }
 0x333   :  { %959 = vmatpush1.bf16.msra.mxu0 %v1961_v8  ;;  %1000 = vmatpush1.bf16.msra.mxu1 %v1967_v9 }
 0x334   :  { %960 = vmatprep.subr.bf16.mxu0 %v1974_v10  ;;  %1001 = vmatprep.subr.bf16.mxu1 %v1981_v11 }
 0x335   :  { %990 = vmatprep.mubr.bf16.mxu0 %v2740_v2  ;;  %1031 = vmatprep.mubr.bf16.mxu1 %v2740_v2 }
 0x337   :  { %961 = vmatpush1.bf16.msra.mxu0 %v1986_v12  ;;  %1002 = vmatpush1.bf16.msra.mxu1 %v1991_v13 }
 0x338   :  { %962 = vmatprep.subr.bf16.mxu0 %v2003_v15  ;;  %1003 = vmatprep.subr.bf16.mxu1 %v2009_v16 }
 0x33b   :  { %963 = vmatpush1.bf16.msra.mxu0 %v2015_v17  ;;  %1004 = vmatpush1.bf16.msra.mxu1 %v2020_v18 }
 0x33c   :  { %964 = vmatprep.subr.bf16.mxu0 %v2027_v19  ;;  %1005 = vmatprep.subr.bf16.mxu1 %v2033_v20 }
 0x33f   :  { %965 = vmatpush1.bf16.msra.mxu0 %v2040_v21  ;;  %1006 = vmatpush1.bf16.msra.mxu1 %v2046_v22 }
 0x340   :  { %966 = vmatprep.subr.bf16.mxu0 %v2054_v23  ;;  %1007 = vmatprep.subr.bf16.mxu1 %v2061_v24 }
 0x343   :  { %967 = vmatpush1.bf16.msra.mxu0 %v2070_v26  ;;  %1008 = vmatpush1.bf16.msra.mxu1 %v2077_v27 }
 0x344   :  { %968 = vmatprep.subr.bf16.mxu0 %v2082_v28  ;;  %1009 = vmatprep.subr.bf16.mxu1 %v2088_v29 }
 0x347   :  { %969 = vmatpush1.bf16.msra.mxu0 %v2096_v30  ;;  %1010 = vmatpush1.bf16.msra.mxu1 %v2101_v31 }
 0x348   :  { %970 = vmatprep.subr.bf16.mxu0 %v2109_v32  ;;  %1011 = vmatprep.subr.bf16.mxu1 %v2116_v33 }
 0x34b   :  { %971 = vmatpush1.bf16.msra.mxu0 %v2125_v35  ;;  %1012 = vmatpush1.bf16.msra.mxu1 %v2132_v36 }
 0x34c   :  { %972 = vmatprep.subr.bf16.mxu0 %v2137_v37  ;;  %1013 = vmatprep.subr.bf16.mxu1 %v2143_v38 }
 0x34f   :  { %973 = vmatpush1.bf16.msra.mxu0 %v2151_v39  ;;  %1014 = vmatpush1.bf16.msra.mxu1 %v2159_v40 }
 0x350   :  { %1074 = vmatprep.subr.bf16.mxu0 %v1951_v6  ;;  %1115 = vmatprep.subr.bf16.mxu1 %v1956_v7 }
 0x405   :  { %v876_v45 = vpop.f32.mrb[28].mxu0  ;;  %v917_v3 = vpop.f32.mrb[28].mxu1 }
 0x406   :  { %v924_v53 = vadd.f32 %v876_v45, %v2742_v50  ;;  %v926_v51 = vadd.f32 %v917_v3, %v2743_v49  ;;  %v878_v54 = vpop.f32.mrb[29].mxu0  ;;  %v919_v52 = vpop.f32.mrb[29].mxu1 }
 0x407   :  { %v925_v55 = vadd.f32 %v878_v54, %v2744_v1  ;;  %v927_v57 = vadd.f32 %v919_v52, %v2745_v56  ;;  %v880_v46 = vpop.f32.mrb[30].mxu0  ;;  %v921_v59 = vpop.f32.mrb[30].mxu1 }
 0x408   :  { %v1605_v61 = vmul.f32 -1.442695, %v924_v53  ;;  %v881_v63 = vpop.f32.mrb[31].mxu0  ;;  %v922_v62 = vpop.f32.mrb[31].mxu1 }
 0x409   :  { %v1606_v6 = vmul.f32 -1.442695, %v925_v55  ;;  %v1607_v7 = vmul.f32 -1.442695, %v927_v57 }
 0x40a   :  { %1776 = vpow2.f32 %v1605_v61 }
 0x40b   :  { %1778 = vpow2.f32 %v1606_v6  ;;  %v2470_v6 = vld [vmem:[%s2712_s2] ss:$16 sps:$4 sm:$0xff]  }
 0x40c   :  { %1780 = vpow2.f32 %v1607_v7  ;;  %v2476_v7 = vld [vmem:[%s2712_s2 + $0x8] ss:$16 sps:$4 sm:$0xff]  }
 0x40d   :  { %1782 = vtanh.f32 %v926_v51 }
 0x414   :  { %v1777_v4 = vpop.eup %1776 }
 0x415   :  { %v1779_v14 = vpop.eup %1778  ;;  %v931_v34 = vadd.f32 1.0, %v1777_v4  ;;  %v2482_v4 = vld [vmem:[%s2712_s2 + $0x24] ss:$16 sps:$4 sm:$0xff]  }
 0x416   :  { %v937_v0 = vadd.f32 1.0, %v1779_v14  ;;  %v1781_v5 = vpop.eup %1780  ;;  %v2488_v14 = vld [vmem:[%s2712_s2 + $0x2c] ss:$16 sps:$4 sm:$0xff]  }
 0x417   :  { %1784 = vrcp.f32 %v931_v34  ;;  %v1783_v42 = vpop.eup %1782  ;;  %v944_v43 = vadd.f32 1.0, %v1781_v5  ;;  %v2496_v34 = vld [vmem:[%s2712_s2 + $0x20] ss:$16 sps:$4 sm:$0xff]   ;;  %v2508_v5 = vld [vmem:[%s2712_s2 + $0x44] ss:$16 sps:$4 sm:$0xff]  }
 0x418   :  { %1786 = vrcp.f32 %v937_v0  ;;  %v2502_v0 = vld [vmem:[%s2712_s2 + $0x28] ss:$16 sps:$4 sm:$0xff]  }
 0x419   :  { %1788 = vrcp.f32 %v944_v43  ;;  %v2538_v43 = vld [vmem:[%s2712_s2 + $0x6c] ss:$16 sps:$4 sm:$0xff]  }
 0x421   :  { %v1785_v44 = vpop.eup %1784 }
 0x422   :  { %v1787_v25 = vpop.eup %1786  ;;  %v948_v48 = vmul.f32 %v1785_v44, %v1783_v42  ;;  %v2514_v42 = vld [vmem:[%s2712_s2 + $0x4c] ss:$16 sps:$4 sm:$0xff]   ;;  %v2520_v44 = vld [vmem:[%s2712_s2 + $0x40] ss:$16 sps:$4 sm:$0xff]  }
 0x423   :  { %v947_v47 = vmul.f32 %v1787_v25, %v2370_v41  ;;  %v1789_v58 = vpop.eup %1788  ;;  %v2526_v25 = vld [vmem:[%s2712_s2 + $0x48] ss:$16 sps:$4 sm:$0xff]  }
 0x425   :  { %v2412_v60 = vadd.f32 %v948_v48, %v947_v47  ;;  %v2532_v48 = vld [vmem:[%s2712_s2 + $0x64] ss:$16 sps:$4 sm:$0xff]   ;;  %v2544_v47 = vld [vmem:[%s2712_s2 + $0x60] ss:$16 sps:$4 sm:$0xff]  }
 0x427   :  { %1790 = vtanh.f32 %v2412_v60 }
 0x431   :  { %v1791_v45 = vpop.eup %1790 }
 0x432   :  { %v951_v3 = vmul.f32 %v1791_v45, %v1789_v58  ;;  %v2556_v58 = vld [vmem:[%s2712_s2 + $0x84] ss:$16 sps:$4 sm:$0xff]   ;;  %v2562_v45 = vld [vmem:[%s2712_s2 + $0x8c] ss:$16 sps:$4 sm:$0xff]  }
 0x434   :  { %v957_v50 = vpack.c.bf16 %v951_v3, %v951_v3  ;;  %v2568_v3 = vld [vmem:[%s2712_s2 + $0x80] ss:$16 sps:$4 sm:$0xff]  }
 0x436   :  { %991 = vmatmul.mubr.bf16.vlgmr.msra.gmra.mrb[32].mxu0 %v957_v50  ;;  %1032 = vmatmul.mubr.bf16.vlgmr.msra.gmra.mrb[32].mxu1 %v957_v50  ;;  %v2574_v50 = vld [vmem:[%s2712_s2 + $0x88] ss:$16 sps:$4 sm:$0xff]  }
 0x437   :  { %1075 = vmatpush1.bf16.msra.mxu0 %v1961_v8  ;;  %1116 = vmatpush1.bf16.msra.mxu1 %v1967_v9  ;;  %v2450_v8 = vld [vmem:[%s2712_s2 + $0x4] ss:$16 sps:$4 sm:$0xff]   ;;  %v2456_v9 = vld [vmem:[%s2712_s2 + $0xc] ss:$16 sps:$4 sm:$0xff]  }
 0x438   :  { %1076 = vmatprep.subr.bf16.mxu0 %v1974_v10  ;;  %1117 = vmatprep.subr.bf16.mxu1 %v1981_v11 }
 0x439   :  { %1106 = vmatprep.mubr.bf16.mxu0 %v2740_v2  ;;  %1147 = vmatprep.mubr.bf16.mxu1 %v2740_v2 }
 0x43b   :  { %1077 = vmatpush1.bf16.msra.mxu0 %v1986_v12  ;;  %1118 = vmatpush1.bf16.msra.mxu1 %v1991_v13  ;;  %v2746_v12 = vld [vmem:[#allocation10_spill] sm:$0xff] }
 0x43c   :  { %1078 = vmatprep.subr.bf16.mxu0 %v2003_v15  ;;  %1119 = vmatprep.subr.bf16.mxu1 %v2009_v16  ;;  %v2747_v15 = vld [vmem:[#allocation11_spill] sm:$0xff] }
 0x43f   :  { %1079 = vmatpush1.bf16.msra.mxu0 %v2015_v17  ;;  %1120 = vmatpush1.bf16.msra.mxu1 %v2020_v18 }
 0x440   :  { %1080 = vmatprep.subr.bf16.mxu0 %v2027_v19  ;;  %1121 = vmatprep.subr.bf16.mxu1 %v2033_v20  ;;  %v2748_v19 = vld [vmem:[#allocation12_spill] sm:$0xff] }
 0x443   :  { %1081 = vmatpush1.bf16.msra.mxu0 %v2040_v21  ;;  %1122 = vmatpush1.bf16.msra.mxu1 %v2046_v22  ;;  %v2749_v21 = vld [vmem:[#allocation13_spill] sm:$0xff] }
 0x444   :  { %1082 = vmatprep.subr.bf16.mxu0 %v2054_v23  ;;  %1123 = vmatprep.subr.bf16.mxu1 %v2061_v24 }
 0x447   :  { %1083 = vmatpush1.bf16.msra.mxu0 %v2070_v26  ;;  %1124 = vmatpush1.bf16.msra.mxu1 %v2077_v27 }
 0x448   :  { %1084 = vmatprep.subr.bf16.mxu0 %v2082_v28  ;;  %1125 = vmatprep.subr.bf16.mxu1 %v2088_v29 }
 0x44b   :  { %1085 = vmatpush1.bf16.msra.mxu0 %v2096_v30  ;;  %1126 = vmatpush1.bf16.msra.mxu1 %v2101_v31 }
 0x44c   :  { %1086 = vmatprep.subr.bf16.mxu0 %v2109_v32  ;;  %1127 = vmatprep.subr.bf16.mxu1 %v2116_v33 }
 0x44f   :  { %1087 = vmatpush1.bf16.msra.mxu0 %v2125_v35  ;;  %1128 = vmatpush1.bf16.msra.mxu1 %v2132_v36 }
 0x450   :  { %1088 = vmatprep.subr.bf16.mxu0 %v2137_v37  ;;  %1129 = vmatprep.subr.bf16.mxu1 %v2143_v38 }
 0x453   :  { %1089 = vmatpush1.bf16.msra.mxu0 %v2151_v39  ;;  %1130 = vmatpush1.bf16.msra.mxu1 %v2159_v40 }
 0x454   :  { %1190 = vmatprep.subr.bf16.mxu0 %v2450_v8  ;;  %1231 = vmatprep.subr.bf16.mxu1 %v2456_v9 }
 0x509   :  { %v992_v10 = vpop.f32.mrb[32].mxu0  ;;  %v1033_v11 = vpop.f32.mrb[32].mxu1 }
 0x50a   :  { %v1040_v13 = vadd.f32 %v992_v10, %v2746_v12  ;;  %v1042_v16 = vadd.f32 %v1033_v11, %v2747_v15  ;;  %v994_v17 = vpop.f32.mrb[33].mxu0  ;;  %v1035_v18 = vpop.f32.mrb[33].mxu1  ;;  %v2580_v10 = vld [vmem:[%s2712_s2 + $0xa4] ss:$16 sps:$4 sm:$0xff]   ;;  %v2586_v11 = vld [vmem:[%s2712_s2 + $0xac] ss:$16 sps:$4 sm:$0xff]  }
 0x50b   :  { %v1041_v20 = vadd.f32 %v994_v17, %v2748_v19  ;;  %v1043_v22 = vadd.f32 %v1035_v18, %v2749_v21  ;;  %v996_v23 = vpop.f32.mrb[34].mxu0  ;;  %v1037_v24 = vpop.f32.mrb[34].mxu1  ;;  %v2592_v12 = vld [vmem:[%s2712_s2 + $0xa0] ss:$16 sps:$4 sm:$0xff]   ;;  %v2752_v19 = vld [vmem:[#allocation16_spill] sm:$0xff] }
 0x50c   :  { %v1608_v26 = vmul.f32 -1.442695, %v1040_v13  ;;  %v997_v27 = vpop.f32.mrb[35].mxu0  ;;  %v1038_v28 = vpop.f32.mrb[35].mxu1  ;;  %v2598_v13 = vld [vmem:[%s2712_s2 + $0xa8] ss:$16 sps:$4 sm:$0xff]  }
 0x50d   :  { %v1609_v29 = vmul.f32 -1.442695, %v1041_v20  ;;  %v1610_v30 = vmul.f32 -1.442695, %v1043_v22  ;;  %v2751_v17 = vld [vmem:[#allocation15_spill] sm:$0xff]  ;;  %v2753_v20 = vld [vmem:[#allocation17_spill] sm:$0xff] }
 0x50e   :  { %1792 = vpow2.f32 %v1608_v26 }
 0x50f   :  { %1794 = vpow2.f32 %v1609_v29 }
 0x510   :  { %1796 = vpow2.f32 %v1610_v30 }
 0x511   :  { %1798 = vtanh.f32 %v1042_v16  ;;  %v2750_v16 = vld [vmem:[#allocation14_spill] sm:$0xff] }
 0x518   :  { %v1793_v31 = vpop.eup %1792 }
 0x519   :  { %v1795_v41 = vpop.eup %1794  ;;  %v1047_v53 = vadd.f32 1.0, %v1793_v31 }
 0x51a   :  { %v1053_v49 = vadd.f32 1.0, %v1795_v41  ;;  %v1797_v51 = vpop.eup %1796 }
 0x51b   :  { %1800 = vrcp.f32 %v1047_v53  ;;  %v1799_v54 = vpop.eup %1798  ;;  %v1060_v56 = vadd.f32 1.0, %v1797_v51 }
 0x51c   :  { %1802 = vrcp.f32 %v1053_v49 }
 0x51d   :  { %1804 = vrcp.f32 %v1060_v56 }
 0x525   :  { %v1801_v52 = vpop.eup %1800 }
 0x526   :  { %v1803_v1 = vpop.eup %1802  ;;  %v1064_v55 = vmul.f32 %v1801_v52, %v1799_v54 }
 0x527   :  { %v1063_v57 = vmul.f32 %v1803_v1, %v2412_v60  ;;  %v1805_v59 = vpop.eup %1804  ;;  %v2550_v60 = vld [vmem:[%s2712_s2 + $0x68] ss:$16 sps:$4 sm:$0xff]  }
 0x529   :  { %v2464_v46 = vadd.f32 %v1064_v55, %v1063_v57  ;;  %v1885_v57 = vld [vmem:[%s2712_s2 + $0xcc] ss:$16 sps:$4 sm:$0xff]  }
 0x52b   :  { %1806 = vtanh.f32 %v2464_v46 }
 0x535   :  { %v1807_v61 = vpop.eup %1806 }
 0x536   :  { %v1067_v63 = vmul.f32 %v1807_v61, %v1805_v59  ;;  %v1887_v59 = vld [vmem:[%s2712_s2 + $0xc8] ss:$16 sps:$4 sm:$0xff]   ;;  %v1888_v61 = vld [vmem:[%s2712_s2 + $0xe4] ss:$16 sps:$4 sm:$0xff]  }
 0x538   :  { %v1073_v62 = vpack.c.bf16 %v1067_v63, %v1067_v63  ;;  %v1889_v63 = vld [vmem:[%s2712_s2 + $0xec] ss:$16 sps:$4 sm:$0xff]  }
 0x53a   :  { %1107 = vmatmul.mubr.bf16.vlgmr.msra.gmra.mrb[36].mxu0 %v1073_v62  ;;  %1148 = vmatmul.mubr.bf16.vlgmr.msra.gmra.mrb[36].mxu1 %v1073_v62  ;;  %v1890_v62 = vld [vmem:[%s2712_s2 + $0xe0] ss:$16 sps:$4 sm:$0xff]  }
 0x53b   :  { %1191 = vmatpush1.bf16.msra.mxu0 %v2470_v6  ;;  %1232 = vmatpush1.bf16.msra.mxu1 %v2476_v7 }
 0x53c   :  { %1192 = vmatprep.subr.bf16.mxu0 %v2482_v4  ;;  %1233 = vmatprep.subr.bf16.mxu1 %v2488_v14 }
 0x53d   :  { %1222 = vmatprep.mubr.bf16.mxu0 %v2740_v2  ;;  %1263 = vmatprep.mubr.bf16.mxu1 %v2740_v2 }
 0x53f   :  { %1193 = vmatpush1.bf16.msra.mxu0 %v2496_v34  ;;  %1234 = vmatpush1.bf16.msra.mxu1 %v2502_v0 }
 0x540   :  { %1194 = vmatprep.subr.bf16.mxu0 %v2508_v5  ;;  %1235 = vmatprep.subr.bf16.mxu1 %v2514_v42 }
 0x543   :  { %1195 = vmatpush1.bf16.msra.mxu0 %v2520_v44  ;;  %1236 = vmatpush1.bf16.msra.mxu1 %v2526_v25 }
 0x544   :  { %1196 = vmatprep.subr.bf16.mxu0 %v2532_v48  ;;  %1237 = vmatprep.subr.bf16.mxu1 %v2538_v43 }
 0x547   :  { %1197 = vmatpush1.bf16.msra.mxu0 %v2544_v47  ;;  %1238 = vmatpush1.bf16.msra.mxu1 %v2550_v60 }
 0x548   :  { %1198 = vmatprep.subr.bf16.mxu0 %v2556_v58  ;;  %1239 = vmatprep.subr.bf16.mxu1 %v2562_v45 }
 0x54b   :  { %1199 = vmatpush1.bf16.msra.mxu0 %v2568_v3  ;;  %1240 = vmatpush1.bf16.msra.mxu1 %v2574_v50 }
 0x54c   :  { %1200 = vmatprep.subr.bf16.mxu0 %v2580_v10  ;;  %1241 = vmatprep.subr.bf16.mxu1 %v2586_v11 }
 0x54f   :  { %1201 = vmatpush1.bf16.msra.mxu0 %v2592_v12  ;;  %1242 = vmatpush1.bf16.msra.mxu1 %v2598_v13 }
 0x550   :  { %1202 = vmatprep.subr.bf16.mxu0 %v2109_v32  ;;  %1243 = vmatprep.subr.bf16.mxu1 %v2116_v33 }
 0x553   :  { %1203 = vmatpush1.bf16.msra.mxu0 %v2125_v35  ;;  %1244 = vmatpush1.bf16.msra.mxu1 %v2132_v36 }
 0x554   :  { %1204 = vmatprep.subr.bf16.mxu0 %v2137_v37  ;;  %1245 = vmatprep.subr.bf16.mxu1 %v2143_v38 }
 0x557   :  { %1205 = vmatpush1.bf16.msra.mxu0 %v2151_v39  ;;  %1246 = vmatpush1.bf16.msra.mxu1 %v2159_v40 }
 0x558   :  { %1306 = vmatprep.subr.bf16.mxu0 %v2450_v8  ;;  %1347 = vmatprep.subr.bf16.mxu1 %v2456_v9 }
 0x60d   :  { %v1108_v15 = vpop.f32.mrb[36].mxu0  ;;  %v1149_v32 = vpop.f32.mrb[36].mxu1 }
 0x60e   :  { %v1156_v33 = vadd.f32 %v1108_v15, %v2750_v16  ;;  %v1158_v35 = vadd.f32 %v1149_v32, %v2751_v17  ;;  %v1110_v18 = vpop.f32.mrb[37].mxu0  ;;  %v1151_v36 = vpop.f32.mrb[37].mxu1 }
 0x60f   :  { %v1157_v37 = vadd.f32 %v1110_v18, %v2752_v19  ;;  %v1159_v38 = vadd.f32 %v1151_v36, %v2753_v20  ;;  %v1112_v21 = vpop.f32.mrb[38].mxu0  ;;  %v1153_v39 = vpop.f32.mrb[38].mxu1 }
 0x610   :  { %v1611_v22 = vmul.f32 -1.442695, %v1156_v33  ;;  %v1113_v40 = vpop.f32.mrb[39].mxu0  ;;  %v1154_v23 = vpop.f32.mrb[39].mxu1 }
 0x611   :  { %v1612_v8 = vmul.f32 -1.442695, %v1157_v37  ;;  %v1613_v9 = vmul.f32 -1.442695, %v1159_v38  ;;  %v1894_v40 = vmov 0.0   ;;  %v1721_v23 = vld [vmem:[%s2714_s4 + $0x8] sm:$0xff]  }
 0x612   :  { %1808 = vpow2.f32 %v1611_v22  ;;  %v1720_v22 = vld [vmem:[%s2714_s4] sm:$0xff]  }
 0x613   :  { %1810 = vpow2.f32 %v1612_v8  ;;  %v1722_v8 = vld [vmem:[%s2714_s4 + $0x10] sm:$0xff]  }
 0x614   :  { %1812 = vpow2.f32 %v1613_v9  ;;  %v1723_v9 = vld [vmem:[%s2714_s4 + $0x18] sm:$0xff]  }
 0x615   :  { %1814 = vtanh.f32 %v1158_v35 }
 0x61c   :  { %v1809_v24 = vpop.eup %1808 }
 0x61d   :  { %v1811_v26 = vpop.eup %1810  ;;  %v1163_v27 = vadd.f32 1.0, %v1809_v24  ;;  %v1724_v24 = vld [vmem:[%s2714_s4 + $0x20] sm:$0xff]  }
 0x61e   :  { %v1169_v28 = vadd.f32 1.0, %v1811_v26  ;;  %v1813_v29 = vpop.eup %1812  ;;  %v1725_v26 = vld [vmem:[%s2714_s4 + $0x28] sm:$0xff]  }
 0x61f   :  { %1816 = vrcp.f32 %v1163_v27  ;;  %v1815_v30 = vpop.eup %1814  ;;  %v1176_v49 = vadd.f32 1.0, %v1813_v29  ;;  %v1726_v27 = vld [vmem:[%s2714_s4 + $0x30] sm:$0xff]  }
 0x620   :  { %1818 = vrcp.f32 %v1169_v28  ;;  %v1727_v28 = vld [vmem:[%s2714_s4 + $0x38] sm:$0xff]  }
 0x621   :  { %1820 = vrcp.f32 %v1176_v49 }
 0x629   :  { %v1817_v31 = vpop.eup %1816 }
 0x62a   :  { %v1819_v41 = vpop.eup %1818  ;;  %v1180_v53 = vmul.f32 %v1817_v31, %v1815_v30  ;;  %v2758_v31 = vld [vmem:[#allocation22_spill] sm:$0xff] }
 0x62b   :  { %v1179_v51 = vmul.f32 %v1819_v41, %v2464_v46  ;;  %v1821_v52 = vpop.eup %1820  ;;  %v1886_v46 = vld [vmem:[%s2712_s2 + $0xc0] ss:$16 sps:$4 sm:$0xff]  }
 0x62d   :  { %v2616_v54 = vadd.f32 %v1180_v53, %v1179_v51  ;;  %v2759_v53 = vld [vmem:[#allocation23_spill] sm:$0xff] }
 0x62f   :  { %1822 = vtanh.f32 %v2616_v54 }
 0x639   :  { %v1823_v1 = vpop.eup %1822 }
 0x63a   :  { %v1183_v55 = vmul.f32 %v1823_v1, %v1821_v52  ;;  %v2760_v52 = vld [vmem:[#allocation24_spill] sm:$0xff] }
 0x63c   :  { %v1189_v56 = vpack.c.bf16 %v1183_v55, %v1183_v55  ;;  %v2761_v55 = vld [vmem:[#allocation25_spill] sm:$0xff] }
 0x63e   :  { %1223 = vmatmul.mubr.bf16.vlgmr.msra.gmra.mrb[40].mxu0 %v1189_v56  ;;  %1264 = vmatmul.mubr.bf16.vlgmr.msra.gmra.mrb[40].mxu1 %v1189_v56 }
 0x63f   :  { %1307 = vmatpush1.bf16.msra.mxu0 %v2470_v6  ;;  %1348 = vmatpush1.bf16.msra.mxu1 %v2476_v7  ;;  %v1891_v6 = vld [vmem:[%s2712_s2 + $0xe8] ss:$16 sps:$4 sm:$0xff]  }
 0x640   :  { %1308 = vmatprep.subr.bf16.mxu0 %v2482_v4  ;;  %1349 = vmatprep.subr.bf16.mxu1 %v2488_v14  ;;  %v2754_v14 = vld [vmem:[#allocation18_spill] sm:$0xff] }
 0x641   :  { %1338 = vmatprep.mubr.bf16.mxu0 %v2740_v2  ;;  %1379 = vmatprep.mubr.bf16.mxu1 %v2740_v2  ;;  %v1884_v2 = vld [vmem:[%s2712_s2 + $0xc4] ss:$16 sps:$4 sm:$0xff]  }
 0x643   :  { %1309 = vmatpush1.bf16.msra.mxu0 %v2496_v34  ;;  %1350 = vmatpush1.bf16.msra.mxu1 %v2502_v0  ;;  %v2755_v0 = vld [vmem:[#allocation19_spill] sm:$0xff] }
 0x644   :  { %1310 = vmatprep.subr.bf16.mxu0 %v2508_v5  ;;  %1351 = vmatprep.subr.bf16.mxu1 %v2514_v42 }
 0x647   :  { %1311 = vmatpush1.bf16.msra.mxu0 %v2520_v44  ;;  %1352 = vmatpush1.bf16.msra.mxu1 %v2526_v25  ;;  %v2756_v25 = vld [vmem:[#allocation20_spill] sm:$0xff] }
 0x648   :  { %1312 = vmatprep.subr.bf16.mxu0 %v2532_v48  ;;  %1353 = vmatprep.subr.bf16.mxu1 %v2538_v43  ;;  %v2757_v43 = vld [vmem:[#allocation21_spill] sm:$0xff] }
 0x64b   :  { %1313 = vmatpush1.bf16.msra.mxu0 %v2544_v47  ;;  %1354 = vmatpush1.bf16.msra.mxu1 %v2550_v60 }
 0x64c   :  { %1314 = vmatprep.subr.bf16.mxu0 %v2556_v58  ;;  %1355 = vmatprep.subr.bf16.mxu1 %v2562_v45 }
 0x64f   :  { %1315 = vmatpush1.bf16.msra.mxu0 %v2568_v3  ;;  %1356 = vmatpush1.bf16.msra.mxu1 %v2574_v50 }
 0x650   :  { %1316 = vmatprep.subr.bf16.mxu0 %v2580_v10  ;;  %1357 = vmatprep.subr.bf16.mxu1 %v2586_v11 }
 0x653   :  { %1317 = vmatpush1.bf16.msra.mxu0 %v2592_v12  ;;  %1358 = vmatpush1.bf16.msra.mxu1 %v2598_v13 }
 0x654   :  { %1318 = vmatprep.subr.bf16.mxu0 %v1884_v2  ;;  %1359 = vmatprep.subr.bf16.mxu1 %v1885_v57 }
 0x657   :  { %1319 = vmatpush1.bf16.msra.mxu0 %v1886_v46  ;;  %1360 = vmatpush1.bf16.msra.mxu1 %v1887_v59 }
 0x658   :  { %1320 = vmatprep.subr.bf16.mxu0 %v1888_v61  ;;  %1361 = vmatprep.subr.bf16.mxu1 %v1889_v63 }
 0x65b   :  { %1321 = vmatpush1.bf16.msra.mxu0 %v1890_v62  ;;  %1362 = vmatpush1.bf16.msra.mxu1 %v1891_v6 }
 0x65c   :  { %1638 = vmatprep.subr.bf16.mxu0 %v1894_v40 }
 0x711   :  { %v1224_v7 = vpop.f32.mrb[40].mxu0  ;;  %v1265_v4 = vpop.f32.mrb[40].mxu1 }
 0x712   :  { %v1272_v34 = vadd.f32 %v1224_v7, %v2754_v14  ;;  %v1274_v5 = vadd.f32 %v1265_v4, %v2755_v0  ;;  %v1226_v42 = vpop.f32.mrb[41].mxu0  ;;  %v1267_v44 = vpop.f32.mrb[41].mxu1 }
 0x713   :  { %v1273_v48 = vadd.f32 %v1226_v42, %v2756_v25  ;;  %v1275_v47 = vadd.f32 %v1267_v44, %v2757_v43  ;;  %v1228_v60 = vpop.f32.mrb[42].mxu0  ;;  %v1269_v58 = vpop.f32.mrb[42].mxu1 }
 0x714   :  { %v1614_v45 = vmul.f32 -1.442695, %v1272_v34  ;;  %v1229_v3 = vpop.f32.mrb[43].mxu0  ;;  %v1270_v50 = vpop.f32.mrb[43].mxu1 }
 0x715   :  { %v1615_v10 = vmul.f32 -1.442695, %v1273_v48  ;;  %v1616_v11 = vmul.f32 -1.442695, %v1275_v47  ;;  %v1620_v50 = vld [vmem:[%s2715_s5] ss:$0 sm:$0xff] }
 0x716   :  { %1824 = vpow2.f32 %v1614_v45 }
 0x717   :  { %1826 = vpow2.f32 %v1615_v10 }
 0x718   :  { %1828 = vpow2.f32 %v1616_v11 }
 0x719   :  { %1830 = vtanh.f32 %v1274_v5 }
 0x720   :  { %v1825_v12 = vpop.eup %1824 }
 0x721   :  { %v1827_v13 = vpop.eup %1826  ;;  %v1279_v15 = vadd.f32 1.0, %v1825_v12 }
 0x722   :  { %v1285_v32 = vadd.f32 1.0, %v1827_v13  ;;  %v1829_v16 = vpop.eup %1828 }
 0x723   :  { %1832 = vrcp.f32 %v1279_v15  ;;  %v1831_v33 = vpop.eup %1830  ;;  %v1292_v36 = vadd.f32 1.0, %v1829_v16 }
 0x724   :  { %1834 = vrcp.f32 %v1285_v32 }
 0x725   :  { %1836 = vrcp.f32 %v1292_v36 }
 0x72d   :  { %v1833_v17 = vpop.eup %1832 }
 0x72e   :  { %v1835_v35 = vpop.eup %1834  ;;  %v1296_v18 = vmul.f32 %v1833_v17, %v1831_v33 }
 0x72f   :  { %v1295_v19 = vmul.f32 %v1835_v35, %v2616_v54  ;;  %v1837_v20 = vpop.eup %1836 }
 0x731   :  { %v2672_v37 = vadd.f32 %v1296_v18, %v1295_v19 }
 0x733   :  { %1838 = vtanh.f32 %v2672_v37 }
 0x73d   :  { %v1839_v38 = vpop.eup %1838 }
 0x73e   :  { %v1299_v21 = vmul.f32 %v1839_v38, %v1837_v20 }
 0x740   :  { %v1305_v39 = vpack.c.bf16 %v1299_v21, %v1299_v21 }
 0x742   :  { %1339 = vmatmul.mubr.bf16.vlgmr.msra.gmra.mrb[44].mxu0 %v1305_v39  ;;  %1380 = vmatmul.mubr.bf16.vlgmr.msra.gmra.mrb[44].mxu1 %v1305_v39 }
 0x743   :  { %1639 = vmatpush3.bf16.msra.mxu0 %v1720_v22  ;;  %1654 = vmatprep.mubr.msk.bf16.mxu0 %vm1895_vm1, %v1894_v40 }
 0x744   :  { %1640 = vmatprep.subr.bf16.mxu0 %v1894_v40 }
 0x747   :  { %1641 = vmatpush3.bf16.msra.mxu0 %v1721_v23 }
 0x748   :  { %1642 = vmatprep.subr.bf16.mxu0 %v1894_v40 }
 0x74b   :  { %1643 = vmatpush3.bf16.msra.mxu0 %v1722_v8 }
 0x74c   :  { %1644 = vmatprep.subr.bf16.mxu0 %v1894_v40 }
 0x74f   :  { %1645 = vmatpush3.bf16.msra.mxu0 %v1723_v9 }
 0x750   :  { %1646 = vmatprep.subr.bf16.mxu0 %v1894_v40 }
 0x753   :  { %1647 = vmatpush3.bf16.msra.mxu0 %v1724_v24 }
 0x754   :  { %1648 = vmatprep.subr.bf16.mxu0 %v1894_v40 }
 0x757   :  { %1649 = vmatpush3.bf16.msra.mxu0 %v1725_v26 }
 0x758   :  { %1650 = vmatprep.subr.bf16.mxu0 %v1894_v40 }
 0x75b   :  { %1651 = vmatpush3.bf16.msra.mxu0 %v1726_v27 }
 0x75c   :  { %1652 = vmatprep.subr.bf16.mxu0 %v1894_v40 }
 0x75f   :  { %1653 = vmatpush3.bf16.msra.mxu0 %v1727_v28 }
 0x815   :  { %v1340_v29 = vpop.f32.mrb[44].mxu0  ;;  %v1381_v30 = vpop.f32.mrb[44].mxu1 }
 0x816   :  { %v1388_v41 = vadd.f32 %v1340_v29, %v2758_v31  ;;  %v1390_v49 = vadd.f32 %v1381_v30, %v2759_v53  ;;  %v1342_v51 = vpop.f32.mrb[45].mxu0  ;;  %v1383_v54 = vpop.f32.mrb[45].mxu1 }
 0x817   :  { %v1389_v1 = vadd.f32 %v1342_v51, %v2760_v52  ;;  %v1391_v56 = vadd.f32 %v1383_v54, %v2761_v55  ;;  %v1344_v2 = vpop.f32.mrb[46].mxu0  ;;  %v1385_v57 = vpop.f32.mrb[46].mxu1 }
 0x818   :  { %v1617_v46 = vmul.f32 -1.442695, %v1388_v41  ;;  %v1345_v59 = vpop.f32.mrb[47].mxu0  ;;  %v1386_v61 = vpop.f32.mrb[47].mxu1 }
 0x819   :  { %v1618_v63 = vmul.f32 -1.442695, %v1389_v1  ;;  %v1619_v62 = vmul.f32 -1.442695, %v1391_v56 }
 0x81a   :  { %1840 = vpow2.f32 %v1617_v46 }
 0x81b   :  { %1842 = vpow2.f32 %v1618_v63 }
 0x81c   :  { %1844 = vpow2.f32 %v1619_v62 }
 0x81d   :  { %1846 = vtanh.f32 %v1390_v49 }
 0x824   :  { %v1841_v6 = vpop.eup %1840 }
 0x825   :  { %v1843_v7 = vpop.eup %1842  ;;  %v1395_v4 = vadd.f32 1.0, %v1841_v6 }
 0x826   :  { %v1401_v14 = vadd.f32 1.0, %v1843_v7  ;;  %v1845_v34 = vpop.eup %1844 }
 0x827   :  { %1848 = vrcp.f32 %v1395_v4  ;;  %v1847_v0 = vpop.eup %1846  ;;  %v1408_v25 = vadd.f32 1.0, %v1845_v34 }
 0x828   :  { %1850 = vrcp.f32 %v1401_v14 }
 0x829   :  { %1852 = vrcp.f32 %v1408_v25 }
 0x831   :  { %v1849_v5 = vpop.eup %1848 }
 0x832   :  { %v1851_v42 = vpop.eup %1850  ;;  %v1412_v44 = vmul.f32 %v1849_v5, %v1847_v0 }
 0x833   :  { %v1411_v48 = vmul.f32 %v1851_v42, %v2672_v37  ;;  %v1853_v47 = vpop.eup %1852 }
 0x835   :  { %v1413_v43 = vadd.f32 %v1412_v44, %v1411_v48 }
 0x837   :  { %1854 = vtanh.f32 %v1413_v43 }
 0x841   :  { %v1855_v60 = vpop.eup %1854 }
 0x842   :  { %v1415_v58 = vmul.f32 %v1855_v60, %v1853_v47 }
 0x844   :  { %v1421_v45 = vmax.f32 %v1415_v58, 0.0 }
 0x846   :  { %v1422_v3 = vpack.c.bf16 %v1421_v45, %v1421_v45 }
 0x848   :  { %1655 = vmatmul.mubr.bf16.vlgmr.msra.gmra.mrb[48].mxu0 %v1422_v3 }
 0x91b   :  { %v1528_v10 = vpop.f32.mrb[48].mxu0 }
 0x91c   :  { %v1529_v11 = vadd.f32 %v1620_v50, %v1528_v10  ;;  %v1656_v12 = vpop.f32.mrb[49].mxu0 }
 0x91d   :  { %v1531_v13 = vpop.f32.mrb[50].mxu0 }
 0x91e   :  { %1534 = vmax.xlane.f32.xlu0 %v1529_v11  ;;  %v1657_v15 = vpop.f32.mrb[51].mxu0 }
 0x9ab   :  { %v1535_v32 = vpop.xlane.xlu0 %1534 }
 0x9ac   :  { %v1536_v16 = vsub.f32 %v1529_v11, %v1535_v32 }
 0x9ae   :  { %v1537_v33 = vmul.f32 1.442695, %v1536_v16 }
 0x9b0   :  { %1856 = vpow2.f32 %v1537_v33 }
 0x9ba   :  { %v1857_v17 = vpop.eup %1856 }
 0x9bb   :  { %1539 = vadd.xlane.f32.xlu0 %v1857_v17 }
 0xa48   :  { %v1540_v35 = vpop.xlane.xlu0 %1539 }
 0xa49   :  { %1858 = vrcp.f32 %v1540_v35 }
 0xa53   :  { %v1859_v18 = vpop.eup %1858 }
 0xa54   :  { %v1542_v36 = vmul.f32 %v1859_v18, %v1857_v17 }
 0xa56   :  { %1543 = vst [vmem:[%s2716_s6] sm:$0xff] %v1542_v36 }

</bundles_post_ra>
